<compile_context>
chip_gen: v7x
topology: tpu7x:2x2x1
jax: 0.10.0
libtpu: 0.0.40
codegen_flags: <defaults>
</compile_context>

<pallas_src>
import functools

import jax
import jax.numpy as jnp
from jax.experimental import pallas as pl
from jax.experimental.pallas import tpu as pltpu

# ----------------------------- hyper params -----------------------------
N_NODES = 64        # number of graph nodes
N_FEAT = 16         # in_channels  (nfeat)
HIDDEN = 32         # args.deep_hidden
N_CLASS = 8         # num_tasks    (nclass)
OUT_PAD = 128       # lane-dense padded width of the kernel output
NUM_LAYERS = 3      # args.deep_layers
T_SOFTMAX = 1.0     # args.t (learn_t = False)
EPS_MSG = 1e-7      # GENConv message epsilon
EPS_BN = 1e-5       # BatchNorm1d epsilon

FP32 = jnp.float32
AGG_DTYPE = jnp.bfloat16   # MXU-native input dtype for the aggregation matmul


# ----------------------------- kernel body -----------------------------
def _genconv_aggregate(h, adj, t):
  """GENConv message + softmax aggregation, returns x + m (pre-MLP).

  adj is the bf16 {0,1} adjacency mask A[dst, src]; h is f32 [N, H].
  """
  # message(x_j) = relu(x_j) + eps
  msg = jnp.maximum(h, 0.0) + EPS_MSG                        # [N, H]
  z = t * msg
  # subtract per-channel global max (cancels in the ratio, numerically safe)
  c = jnp.max(z, axis=0, keepdims=True)                      # [1, H]
  e = jnp.exp(z - c)                                         # [N, H]  (EUP)
  # single MXU pass: adj @ [e*msg | e]   (lane width 2H = 64 <= 128)
  rhs = jnp.concatenate([e * msg, e], axis=-1).astype(AGG_DTYPE)   # [N, 2H]
  agg = jnp.dot(adj, rhs, preferred_element_type=FP32)             # [N, 2H] f32
  num = agg[:, :HIDDEN]
  den = agg[:, HIDDEN:]
  den_safe = jnp.where(den > 0.0, den, 1.0)
  # divide via EUP approx reciprocal (frees VALU slots)
  m = jnp.where(den > 0.0, num * pl.reciprocal(den_safe, approx=True), 0.0)
  return h + m


def deeper_gcn_kernel(x_ref, adj_ref, enc_w_ref, enc_b_ref,
                      gcn_w_ref, gcn_b_ref, bn_scale_ref, bn_shift_ref,
                      pred_w_ref, pred_b_ref, o_ref, *, t):
  """Whole DeeperGCN forward (block='res+', eval mode) fused in one kernel."""
  adj = adj_ref[...]                                          # [N, N] bf16

  # 1) node_features_encoder: h = x @ W + b
  h = jnp.dot(x_ref[...], enc_w_ref[...],
              preferred_element_type=FP32) + enc_b_ref[...]   # [N, H]

  # 2) first GENConv on the raw encoder output (res+ block)
  hm = _genconv_aggregate(h, adj, t)
  h = jnp.dot(hm, gcn_w_ref[0], preferred_element_type=FP32) + gcn_b_ref[0]

  # 3) res+ layers 1..L-1 : h = GENConv(relu(BN(h))) + h  (dropout = identity)
  for layer in range(1, NUM_LAYERS):
    h1 = h * bn_scale_ref[layer - 1] + bn_shift_ref[layer - 1]  # folded BN
    h2 = jnp.maximum(h1, 0.0)
    hm = _genconv_aggregate(h2, adj, t)
    h = (jnp.dot(hm, gcn_w_ref[layer], preferred_element_type=FP32)
         + gcn_b_ref[layer] + h)

  # 4) final BN -> ReLU -> prediction linear -> log_softmax (lane-padded)
  h1 = h * bn_scale_ref[NUM_LAYERS - 1] + bn_shift_ref[NUM_LAYERS - 1]
  h2 = jnp.maximum(h1, 0.0)
  logits = (jnp.dot(h2, pred_w_ref[...], preferred_element_type=FP32)
            + pred_b_ref[...])                                # [N, OUT_PAD]
  col = jax.lax.broadcasted_iota(jnp.int32, logits.shape, 1)
  valid = col < N_CLASS
  logits = jnp.where(valid, logits, jnp.float32(-1e30))
  mx = jnp.max(logits, axis=-1, keepdims=True)
  sh = logits - mx
  p = jnp.where(valid, jnp.exp(sh), 0.0)
  lse = jnp.log(jnp.sum(p, axis=-1, keepdims=True))
  o_ref[...] = sh - lse


# ----------------------------- pallas_call glue -----------------------------
def _vmem_spec():
  return pl.BlockSpec(memory_space=pltpu.MemorySpace.VMEM)


@jax.jit
def deeper_gcn_forward(x, adj_dense, params):
  """Full DeeperGCN forward (block='res+', eval mode), single pallas_call."""
  n = x.shape[0]

  # fold eval-mode BatchNorm into a single scale/shift pair
  bn_scale = params["bn_gamma"] * jax.lax.rsqrt(params["bn_var"] + EPS_BN)
  bn_shift = params["bn_beta"] - params["bn_mean"] * bn_scale      # [L, 1, H]

  # zero-pad the prediction head to a lane-dense OUT_PAD-wide output
  pred_w_pad = jnp.zeros((HIDDEN, OUT_PAD), FP32).at[:, :N_CLASS].set(
      params["pred_w"])
  pred_b_pad = jnp.zeros((1, OUT_PAD), FP32).at[:, :N_CLASS].set(
      params["pred_b"])

  adj_bf16 = adj_dense.astype(AGG_DTYPE)   # 0/1 exactly representable

  out_pad = pl.pallas_call(
      functools.partial(deeper_gcn_kernel, t=T_SOFTMAX),
      out_shape=jax.ShapeDtypeStruct((n, OUT_PAD), FP32),
      in_specs=[_vmem_spec() for _ in range(10)],
      out_specs=_vmem_spec(),
  )(x, adj_bf16,
    params["enc_w"], params["enc_b"],
    params["gcn_w"], params["gcn_b"],
    bn_scale, bn_shift,
    pred_w_pad, pred_b_pad)

  return out_pad[:, :N_CLASS]


# ----------------------------- pure-JAX reference -----------------------------
def deeper_gcn_reference(x, adj, params):
  """f32 reference of the same forward pass (for tolerance checking)."""
  def aggregate(h):
    msg = jnp.maximum(h, 0.0) + EPS_MSG
    e = jnp.exp(T_SOFTMAX * msg)
    num = adj @ (e * msg)
    den = adj @ e
    den_safe = jnp.where(den > 0, den, 1.0)
    return h + jnp.where(den > 0, num / den_safe, 0.0)

  def bn(h, i):
    g, b = params["bn_gamma"][i], params["bn_beta"][i]
    m, v = params["bn_mean"][i], params["bn_var"][i]
    return (h - m) / jnp.sqrt(v + EPS_BN) * g + b

  h = x @ params["enc_w"] + params["enc_b"]
  h = aggregate(h) @ params["gcn_w"][0] + params["gcn_b"][0]
  for layer in range(1, NUM_LAYERS):
    h2 = jnp.maximum(bn(h, layer - 1), 0.0)
    h = aggregate(h2) @ params["gcn_w"][layer] + params["gcn_b"][layer] + h
  h2 = jnp.maximum(bn(h, NUM_LAYERS - 1), 0.0)
  logits = h2 @ params["pred_w"] + params["pred_b"]
  return jax.nn.log_softmax(logits, axis=-1)


# ----------------------------- parameter init -----------------------------
def init_params(key):
  def linear_init(key, fan_in, fan_out):
    kw, kb = jax.random.split(key)
    bound = 1.0 / jnp.sqrt(jnp.asarray(fan_in, FP32))
    w = jax.random.uniform(kw, (fan_in, fan_out), FP32, -bound, bound)
    b = jax.random.uniform(kb, (1, fan_out), FP32, -bound, bound)
    return w, b

  keys = jax.random.split(key, 2 + NUM_LAYERS)
  enc_w, enc_b = linear_init(keys[0], N_FEAT, HIDDEN)
  pred_w, pred_b = linear_init(keys[1], HIDDEN, N_CLASS)
  gcn_w, gcn_b = [], []
  for layer in range(NUM_LAYERS):
    w, b = linear_init(keys[2 + layer], HIDDEN, HIDDEN)
    gcn_w.append(w)
    gcn_b.append(b)
  gcn_w = jnp.stack(gcn_w)                               # [L, H, H]
  gcn_b = jnp.stack(gcn_b)                               # [L, 1, H]
  # Fresh BatchNorm1d state (as in module __init__): gamma=1, beta=0,
  # running_mean=0, running_var=1 (eval mode uses running stats).
  bn_gamma = jnp.ones((NUM_LAYERS, 1, HIDDEN), FP32)
  bn_beta = jnp.zeros((NUM_LAYERS, 1, HIDDEN), FP32)
  bn_mean = jnp.zeros((NUM_LAYERS, 1, HIDDEN), FP32)
  bn_var = jnp.ones((NUM_LAYERS, 1, HIDDEN), FP32)
  return dict(enc_w=enc_w, enc_b=enc_b, pred_w=pred_w, pred_b=pred_b,
              gcn_w=gcn_w, gcn_b=gcn_b, bn_gamma=bn_gamma, bn_beta=bn_beta,
              bn_mean=bn_mean, bn_var=bn_var)


# ----------------------------- main -----------------------------
if __name__ == "__main__":
  key = jax.random.PRNGKey(0)
  k_x, k_adj, k_params = jax.random.split(key, 3)

  # node features
  x = jax.random.normal(k_x, (N_NODES, N_FEAT), FP32)

  # duplicate-free dense adjacency A[dst, src] (equivalent to edge_index [2,E])
  # random sparse graph + self-loops so every destination has >= 1 message.
  adj = (jax.random.uniform(k_adj, (N_NODES, N_NODES)) < 0.15).astype(FP32)
  adj = jnp.clip(adj + jnp.eye(N_NODES, dtype=FP32), 0.0, 1.0)

  params = init_params(k_params)

  out = deeper_gcn_forward(x, adj, params)
  out = jax.block_until_ready(out)

  assert out.shape == (N_NODES, N_CLASS)
  # log_softmax rows must sum to ~1 in prob space
  assert jnp.allclose(jnp.sum(jnp.exp(out), axis=-1), 1.0, atol=1e-4)
  assert jnp.all(jnp.isfinite(out))

  # tolerance check vs pure-f32 reference (kernel uses bf16 MXU inputs with
  # f32 accumulation + approx reciprocal)
  ref = deeper_gcn_reference(x, adj, params)
  assert jnp.allclose(out, ref, rtol=5e-2, atol=5e-2), (
      float(jnp.max(jnp.abs(out - ref))))

  print("KERNEL_OK")
</pallas_src>

<mosaic_0001>
module attributes {stable_mosaic.version = 11 : i64} {
  func.func @deeper_gcn_kernel(%arg0: memref<64x16xf32, #tpu.memory_space<vmem>>, %arg1: memref<64x64xbf16, #tpu.memory_space<vmem>>, %arg2: memref<16x32xf32, #tpu.memory_space<vmem>>, %arg3: memref<1x32xf32, #tpu.memory_space<vmem>>, %arg4: memref<3x32x32xf32, #tpu.memory_space<vmem>>, %arg5: memref<3x1x32xf32, #tpu.memory_space<vmem>>, %arg6: memref<3x1x32xf32, #tpu.memory_space<vmem>>, %arg7: memref<3x1x32xf32, #tpu.memory_space<vmem>>, %arg8: memref<32x128xf32, #tpu.memory_space<vmem>>, %arg9: memref<1x128xf32, #tpu.memory_space<vmem>>, %arg10: memref<64x128xf32, #tpu.memory_space<vmem>>) attributes {dimension_semantics = [], scalar_prefetch = 0 : i64, scratch_operands = 0 : i64, tpu.core_type = #tpu.core_type<tc>} {
    %c0 = arith.constant 0 : index
    %c0_0 = arith.constant 0 : index
    %0 = vector.load %arg1[%c0, %c0_0] : memref<64x64xbf16, #tpu.memory_space<vmem>>, vector<64x64xbf16>
    %c0_1 = arith.constant 0 : index
    %c0_2 = arith.constant 0 : index
    %1 = vector.load %arg0[%c0_1, %c0_2] : memref<64x16xf32, #tpu.memory_space<vmem>>, vector<64x16xf32>
    %c0_3 = arith.constant 0 : index
    %c0_4 = arith.constant 0 : index
    %2 = vector.load %arg2[%c0_3, %c0_4] : memref<16x32xf32, #tpu.memory_space<vmem>>, vector<16x32xf32>
    %cst = arith.constant dense<0.000000e+00> : vector<64x32xf32>
    %3 = tpu.matmul %1, %2, %cst {dimension_numbers = #tpu.dot_dimension_numbers<[1], [0], [0], [1], [0, 0, 1, 1], [], []>} : vector<64x16xf32>, vector<16x32xf32>, vector<64x32xf32> -> vector<64x32xf32>
    %c0_5 = arith.constant 0 : index
    %c0_6 = arith.constant 0 : index
    %4 = vector.load %arg3[%c0_5, %c0_6] : memref<1x32xf32, #tpu.memory_space<vmem>>, vector<1x32xf32>
    %5 = vector.broadcast %4 : vector<1x32xf32> to vector<64x32xf32>
    %6 = arith.addf %3, %5 : vector<64x32xf32>
    %cst_7 = arith.constant 0.000000e+00 : f32
    %7 = vector.broadcast %cst_7 : f32 to vector<64x32xf32>
    %8 = arith.maximumf %6, %7 : vector<64x32xf32>
    %cst_8 = arith.constant 1.000000e-07 : f32
    %9 = vector.broadcast %cst_8 : f32 to vector<64x32xf32>
    %10 = arith.addf %8, %9 : vector<64x32xf32>
    %cst_9 = arith.constant 1.000000e+00 : f32
    %11 = vector.broadcast %cst_9 : f32 to vector<64x32xf32>
    %12 = arith.mulf %11, %10 : vector<64x32xf32>
    %cst_10 = arith.constant dense<0xFF800000> : vector<32xf32>
    %13 = vector.multi_reduction <maximumf>, %12, %cst_10 [0] : vector<64x32xf32> to vector<32xf32>
    %14 = vector.shape_cast %13 : vector<32xf32> to vector<1x32xf32>
    %15 = vector.broadcast %14 : vector<1x32xf32> to vector<64x32xf32>
    %16 = arith.subf %12, %15 : vector<64x32xf32>
    %17 = math.exp %16 : vector<64x32xf32>
    %18 = arith.mulf %17, %10 : vector<64x32xf32>
    %19 = tpu.concatenate %18, %17 in 1 : vector<64x32xf32>, vector<64x32xf32> -> vector<64x64xf32>
    %20 = arith.truncf %19 : vector<64x64xf32> to vector<64x64xbf16>
    %cst_11 = arith.constant dense<0.000000e+00> : vector<64x64xf32>
    %21 = tpu.matmul %0, %20, %cst_11 {dimension_numbers = #tpu.dot_dimension_numbers<[1], [0], [0], [1], [0, 0, 1, 1], [], []>} : vector<64x64xbf16>, vector<64x64xbf16>, vector<64x64xf32> -> vector<64x64xf32>
    %22 = vector.extract_strided_slice %21 {offsets = [0, 0], sizes = [64, 32], strides = [1, 1]} : vector<64x64xf32> to vector<64x32xf32>
    %23 = vector.extract_strided_slice %21 {offsets = [0, 32], sizes = [64, 32], strides = [1, 1]} : vector<64x64xf32> to vector<64x32xf32>
    %cst_12 = arith.constant 0.000000e+00 : f32
    %24 = vector.broadcast %cst_12 : f32 to vector<64x32xf32>
    %25 = arith.cmpf ogt, %23, %24 : vector<64x32xf32>
    %cst_13 = arith.constant 1.000000e+00 : f32
    %26 = vector.broadcast %cst_13 : f32 to vector<64x32xf32>
    %27 = arith.select %25, %23, %26 : vector<64x32xi1>, vector<64x32xf32>
    %cst_14 = arith.constant 0.000000e+00 : f32
    %28 = vector.broadcast %cst_14 : f32 to vector<64x32xf32>
    %29 = arith.cmpf ogt, %23, %28 : vector<64x32xf32>
    %30 = tpu.reciprocal %27 {approx = true} : vector<64x32xf32> -> vector<64x32xf32>
    %31 = arith.mulf %22, %30 : vector<64x32xf32>
    %cst_15 = arith.constant 0.000000e+00 : f32
    %32 = vector.broadcast %cst_15 : f32 to vector<64x32xf32>
    %33 = arith.select %29, %31, %32 : vector<64x32xi1>, vector<64x32xf32>
    %34 = arith.addf %6, %33 : vector<64x32xf32>
    %c0_16 = arith.constant 0 : index
    %c0_17 = arith.constant 0 : index
    %c0_18 = arith.constant 0 : index
    %35 = vector.load %arg4[%c0_16, %c0_17, %c0_18] : memref<3x32x32xf32, #tpu.memory_space<vmem>>, vector<1x32x32xf32>
    %36 = vector.shape_cast %35 : vector<1x32x32xf32> to vector<32x32xf32>
    %cst_19 = arith.constant dense<0.000000e+00> : vector<64x32xf32>
    %37 = tpu.matmul %34, %36, %cst_19 {dimension_numbers = #tpu.dot_dimension_numbers<[1], [0], [0], [1], [0, 0, 1, 1], [], []>} : vector<64x32xf32>, vector<32x32xf32>, vector<64x32xf32> -> vector<64x32xf32>
    %c0_20 = arith.constant 0 : index
    %c0_21 = arith.constant 0 : index
    %c0_22 = arith.constant 0 : index
    %38 = vector.load %arg5[%c0_20, %c0_21, %c0_22] : memref<3x1x32xf32, #tpu.memory_space<vmem>>, vector<1x1x32xf32>
    %39 = vector.shape_cast %38 : vector<1x1x32xf32> to vector<1x32xf32>
    %40 = vector.broadcast %39 : vector<1x32xf32> to vector<64x32xf32>
    %41 = arith.addf %37, %40 : vector<64x32xf32>
    %c0_23 = arith.constant 0 : index
    %c0_24 = arith.constant 0 : index
    %c0_25 = arith.constant 0 : index
    %42 = vector.load %arg6[%c0_23, %c0_24, %c0_25] : memref<3x1x32xf32, #tpu.memory_space<vmem>>, vector<1x1x32xf32>
    %43 = vector.shape_cast %42 : vector<1x1x32xf32> to vector<1x32xf32>
    %44 = vector.broadcast %43 : vector<1x32xf32> to vector<64x32xf32>
    %45 = arith.mulf %41, %44 : vector<64x32xf32>
    %c0_26 = arith.constant 0 : index
    %c0_27 = arith.constant 0 : index
    %c0_28 = arith.constant 0 : index
    %46 = vector.load %arg7[%c0_26, %c0_27, %c0_28] : memref<3x1x32xf32, #tpu.memory_space<vmem>>, vector<1x1x32xf32>
    %47 = vector.shape_cast %46 : vector<1x1x32xf32> to vector<1x32xf32>
    %48 = vector.broadcast %47 : vector<1x32xf32> to vector<64x32xf32>
    %49 = arith.addf %45, %48 : vector<64x32xf32>
    %cst_29 = arith.constant 0.000000e+00 : f32
    %50 = vector.broadcast %cst_29 : f32 to vector<64x32xf32>
    %51 = arith.maximumf %49, %50 : vector<64x32xf32>
    %cst_30 = arith.constant 0.000000e+00 : f32
    %52 = vector.broadcast %cst_30 : f32 to vector<64x32xf32>
    %53 = arith.maximumf %51, %52 : vector<64x32xf32>
    %cst_31 = arith.constant 1.000000e-07 : f32
    %54 = vector.broadcast %cst_31 : f32 to vector<64x32xf32>
    %55 = arith.addf %53, %54 : vector<64x32xf32>
    %cst_32 = arith.constant 1.000000e+00 : f32
    %56 = vector.broadcast %cst_32 : f32 to vector<64x32xf32>
    %57 = arith.mulf %56, %55 : vector<64x32xf32>
    %cst_33 = arith.constant dense<0xFF800000> : vector<32xf32>
    %58 = vector.multi_reduction <maximumf>, %57, %cst_33 [0] : vector<64x32xf32> to vector<32xf32>
    %59 = vector.shape_cast %58 : vector<32xf32> to vector<1x32xf32>
    %60 = vector.broadcast %59 : vector<1x32xf32> to vector<64x32xf32>
    %61 = arith.subf %57, %60 : vector<64x32xf32>
    %62 = math.exp %61 : vector<64x32xf32>
    %63 = arith.mulf %62, %55 : vector<64x32xf32>
    %64 = tpu.concatenate %63, %62 in 1 : vector<64x32xf32>, vector<64x32xf32> -> vector<64x64xf32>
    %65 = arith.truncf %64 : vector<64x64xf32> to vector<64x64xbf16>
    %cst_34 = arith.constant dense<0.000000e+00> : vector<64x64xf32>
    %66 = tpu.matmul %0, %65, %cst_34 {dimension_numbers = #tpu.dot_dimension_numbers<[1], [0], [0], [1], [0, 0, 1, 1], [], []>} : vector<64x64xbf16>, vector<64x64xbf16>, vector<64x64xf32> -> vector<64x64xf32>
    %67 = vector.extract_strided_slice %66 {offsets = [0, 0], sizes = [64, 32], strides = [1, 1]} : vector<64x64xf32> to vector<64x32xf32>
    %68 = vector.extract_strided_slice %66 {offsets = [0, 32], sizes = [64, 32], strides = [1, 1]} : vector<64x64xf32> to vector<64x32xf32>
    %cst_35 = arith.constant 0.000000e+00 : f32
    %69 = vector.broadcast %cst_35 : f32 to vector<64x32xf32>
    %70 = arith.cmpf ogt, %68, %69 : vector<64x32xf32>
    %cst_36 = arith.constant 1.000000e+00 : f32
    %71 = vector.broadcast %cst_36 : f32 to vector<64x32xf32>
    %72 = arith.select %70, %68, %71 : vector<64x32xi1>, vector<64x32xf32>
    %cst_37 = arith.constant 0.000000e+00 : f32
    %73 = vector.broadcast %cst_37 : f32 to vector<64x32xf32>
    %74 = arith.cmpf ogt, %68, %73 : vector<64x32xf32>
    %75 = tpu.reciprocal %72 {approx = true} : vector<64x32xf32> -> vector<64x32xf32>
    %76 = arith.mulf %67, %75 : vector<64x32xf32>
    %cst_38 = arith.constant 0.000000e+00 : f32
    %77 = vector.broadcast %cst_38 : f32 to vector<64x32xf32>
    %78 = arith.select %74, %76, %77 : vector<64x32xi1>, vector<64x32xf32>
    %79 = arith.addf %51, %78 : vector<64x32xf32>
    %c1 = arith.constant 1 : index
    %c0_39 = arith.constant 0 : index
    %c0_40 = arith.constant 0 : index
    %80 = vector.load %arg4[%c1, %c0_39, %c0_40] : memref<3x32x32xf32, #tpu.memory_space<vmem>>, vector<1x32x32xf32>
    %81 = vector.shape_cast %80 : vector<1x32x32xf32> to vector<32x32xf32>
    %cst_41 = arith.constant dense<0.000000e+00> : vector<64x32xf32>
    %82 = tpu.matmul %79, %81, %cst_41 {dimension_numbers = #tpu.dot_dimension_numbers<[1], [0], [0], [1], [0, 0, 1, 1], [], []>} : vector<64x32xf32>, vector<32x32xf32>, vector<64x32xf32> -> vector<64x32xf32>
    %c1_42 = arith.constant 1 : index
    %c0_43 = arith.constant 0 : index
    %c0_44 = arith.constant 0 : index
    %83 = vector.load %arg5[%c1_42, %c0_43, %c0_44] : memref<3x1x32xf32, #tpu.memory_space<vmem>>, vector<1x1x32xf32>
    %84 = vector.shape_cast %83 : vector<1x1x32xf32> to vector<1x32xf32>
    %85 = vector.broadcast %84 : vector<1x32xf32> to vector<64x32xf32>
    %86 = arith.addf %82, %85 : vector<64x32xf32>
    %87 = arith.addf %86, %41 : vector<64x32xf32>
    %c1_45 = arith.constant 1 : index
    %c0_46 = arith.constant 0 : index
    %c0_47 = arith.constant 0 : index
    %88 = vector.load %arg6[%c1_45, %c0_46, %c0_47] : memref<3x1x32xf32, #tpu.memory_space<vmem>>, vector<1x1x32xf32>
    %89 = vector.shape_cast %88 : vector<1x1x32xf32> to vector<1x32xf32>
    %90 = vector.broadcast %89 : vector<1x32xf32> to vector<64x32xf32>
    %91 = arith.mulf %87, %90 : vector<64x32xf32>
    %c1_48 = arith.constant 1 : index
    %c0_49 = arith.constant 0 : index
    %c0_50 = arith.constant 0 : index
    %92 = vector.load %arg7[%c1_48, %c0_49, %c0_50] : memref<3x1x32xf32, #tpu.memory_space<vmem>>, vector<1x1x32xf32>
    %93 = vector.shape_cast %92 : vector<1x1x32xf32> to vector<1x32xf32>
    %94 = vector.broadcast %93 : vector<1x32xf32> to vector<64x32xf32>
    %95 = arith.addf %91, %94 : vector<64x32xf32>
    %cst_51 = arith.constant 0.000000e+00 : f32
    %96 = vector.broadcast %cst_51 : f32 to vector<64x32xf32>
    %97 = arith.maximumf %95, %96 : vector<64x32xf32>
    %cst_52 = arith.constant 0.000000e+00 : f32
    %98 = vector.broadcast %cst_52 : f32 to vector<64x32xf32>
    %99 = arith.maximumf %97, %98 : vector<64x32xf32>
    %cst_53 = arith.constant 1.000000e-07 : f32
    %100 = vector.broadcast %cst_53 : f32 to vector<64x32xf32>
    %101 = arith.addf %99, %100 : vector<64x32xf32>
    %cst_54 = arith.constant 1.000000e+00 : f32
    %102 = vector.broadcast %cst_54 : f32 to vector<64x32xf32>
    %103 = arith.mulf %102, %101 : vector<64x32xf32>
    %cst_55 = arith.constant dense<0xFF800000> : vector<32xf32>
    %104 = vector.multi_reduction <maximumf>, %103, %cst_55 [0] : vector<64x32xf32> to vector<32xf32>
    %105 = vector.shape_cast %104 : vector<32xf32> to vector<1x32xf32>
    %106 = vector.broadcast %105 : vector<1x32xf32> to vector<64x32xf32>
    %107 = arith.subf %103, %106 : vector<64x32xf32>
    %108 = math.exp %107 : vector<64x32xf32>
    %109 = arith.mulf %108, %101 : vector<64x32xf32>
    %110 = tpu.concatenate %109, %108 in 1 : vector<64x32xf32>, vector<64x32xf32> -> vector<64x64xf32>
    %111 = arith.truncf %110 : vector<64x64xf32> to vector<64x64xbf16>
    %cst_56 = arith.constant dense<0.000000e+00> : vector<64x64xf32>
    %112 = tpu.matmul %0, %111, %cst_56 {dimension_numbers = #tpu.dot_dimension_numbers<[1], [0], [0], [1], [0, 0, 1, 1], [], []>} : vector<64x64xbf16>, vector<64x64xbf16>, vector<64x64xf32> -> vector<64x64xf32>
    %113 = vector.extract_strided_slice %112 {offsets = [0, 0], sizes = [64, 32], strides = [1, 1]} : vector<64x64xf32> to vector<64x32xf32>
    %114 = vector.extract_strided_slice %112 {offsets = [0, 32], sizes = [64, 32], strides = [1, 1]} : vector<64x64xf32> to vector<64x32xf32>
    %cst_57 = arith.constant 0.000000e+00 : f32
    %115 = vector.broadcast %cst_57 : f32 to vector<64x32xf32>
    %116 = arith.cmpf ogt, %114, %115 : vector<64x32xf32>
    %cst_58 = arith.constant 1.000000e+00 : f32
    %117 = vector.broadcast %cst_58 : f32 to vector<64x32xf32>
    %118 = arith.select %116, %114, %117 : vector<64x32xi1>, vector<64x32xf32>
    %cst_59 = arith.constant 0.000000e+00 : f32
    %119 = vector.broadcast %cst_59 : f32 to vector<64x32xf32>
    %120 = arith.cmpf ogt, %114, %119 : vector<64x32xf32>
    %121 = tpu.reciprocal %118 {approx = true} : vector<64x32xf32> -> vector<64x32xf32>
    %122 = arith.mulf %113, %121 : vector<64x32xf32>
    %cst_60 = arith.constant 0.000000e+00 : f32
    %123 = vector.broadcast %cst_60 : f32 to vector<64x32xf32>
    %124 = arith.select %120, %122, %123 : vector<64x32xi1>, vector<64x32xf32>
    %125 = arith.addf %97, %124 : vector<64x32xf32>
    %c2 = arith.constant 2 : index
    %c0_61 = arith.constant 0 : index
    %c0_62 = arith.constant 0 : index
    %126 = vector.load %arg4[%c2, %c0_61, %c0_62] : memref<3x32x32xf32, #tpu.memory_space<vmem>>, vector<1x32x32xf32>
    %127 = vector.shape_cast %126 : vector<1x32x32xf32> to vector<32x32xf32>
    %cst_63 = arith.constant dense<0.000000e+00> : vector<64x32xf32>
    %128 = tpu.matmul %125, %127, %cst_63 {dimension_numbers = #tpu.dot_dimension_numbers<[1], [0], [0], [1], [0, 0, 1, 1], [], []>} : vector<64x32xf32>, vector<32x32xf32>, vector<64x32xf32> -> vector<64x32xf32>
    %c2_64 = arith.constant 2 : index
    %c0_65 = arith.constant 0 : index
    %c0_66 = arith.constant 0 : index
    %129 = vector.load %arg5[%c2_64, %c0_65, %c0_66] : memref<3x1x32xf32, #tpu.memory_space<vmem>>, vector<1x1x32xf32>
    %130 = vector.shape_cast %129 : vector<1x1x32xf32> to vector<1x32xf32>
    %131 = vector.broadcast %130 : vector<1x32xf32> to vector<64x32xf32>
    %132 = arith.addf %128, %131 : vector<64x32xf32>
    %133 = arith.addf %132, %87 : vector<64x32xf32>
    %c2_67 = arith.constant 2 : index
    %c0_68 = arith.constant 0 : index
    %c0_69 = arith.constant 0 : index
    %134 = vector.load %arg6[%c2_67, %c0_68, %c0_69] : memref<3x1x32xf32, #tpu.memory_space<vmem>>, vector<1x1x32xf32>
    %135 = vector.shape_cast %134 : vector<1x1x32xf32> to vector<1x32xf32>
    %136 = vector.broadcast %135 : vector<1x32xf32> to vector<64x32xf32>
    %137 = arith.mulf %133, %136 : vector<64x32xf32>
    %c2_70 = arith.constant 2 : index
    %c0_71 = arith.constant 0 : index
    %c0_72 = arith.constant 0 : index
    %138 = vector.load %arg7[%c2_70, %c0_71, %c0_72] : memref<3x1x32xf32, #tpu.memory_space<vmem>>, vector<1x1x32xf32>
    %139 = vector.shape_cast %138 : vector<1x1x32xf32> to vector<1x32xf32>
    %140 = vector.broadcast %139 : vector<1x32xf32> to vector<64x32xf32>
    %141 = arith.addf %137, %140 : vector<64x32xf32>
    %cst_73 = arith.constant 0.000000e+00 : f32
    %142 = vector.broadcast %cst_73 : f32 to vector<64x32xf32>
    %143 = arith.maximumf %141, %142 : vector<64x32xf32>
    %c0_74 = arith.constant 0 : index
    %c0_75 = arith.constant 0 : index
    %144 = vector.load %arg8[%c0_74, %c0_75] : memref<32x128xf32, #tpu.memory_space<vmem>>, vector<32x128xf32>
    %cst_76 = arith.constant dense<0.000000e+00> : vector<64x128xf32>
    %145 = tpu.matmul %143, %144, %cst_76 {dimension_numbers = #tpu.dot_dimension_numbers<[1], [0], [0], [1], [0, 0, 1, 1], [], []>} : vector<64x32xf32>, vector<32x128xf32>, vector<64x128xf32> -> vector<64x128xf32>
    %c0_77 = arith.constant 0 : index
    %c0_78 = arith.constant 0 : index
    %146 = vector.load %arg9[%c0_77, %c0_78] : memref<1x128xf32, #tpu.memory_space<vmem>>, vector<1x128xf32>
    %147 = vector.broadcast %146 : vector<1x128xf32> to vector<64x128xf32>
    %148 = arith.addf %145, %147 : vector<64x128xf32>
    %149 = tpu.iota {dimensions = array<i32: 1>} : vector<64x128xi32>
    %c8_i32 = arith.constant 8 : i32
    %150 = vector.broadcast %c8_i32 : i32 to vector<64x128xi32>
    %151 = arith.cmpi slt, %149, %150 : vector<64x128xi32>
    %cst_79 = arith.constant -1.000000e+30 : f32
    %152 = vector.broadcast %cst_79 : f32 to vector<64x128xf32>
    %153 = arith.select %151, %148, %152 : vector<64x128xi1>, vector<64x128xf32>
    %cst_80 = arith.constant dense<0xFF800000> : vector<64xf32>
    %154 = vector.multi_reduction <maximumf>, %153, %cst_80 [1] : vector<64x128xf32> to vector<64xf32>
    %155 = vector.shape_cast %154 : vector<64xf32> to vector<64x1xf32>
    %156 = vector.broadcast %155 : vector<64x1xf32> to vector<64x128xf32>
    %157 = arith.subf %153, %156 : vector<64x128xf32>
    %158 = math.exp %157 : vector<64x128xf32>
    %cst_81 = arith.constant 0.000000e+00 : f32
    %159 = vector.broadcast %cst_81 : f32 to vector<64x128xf32>
    %160 = arith.select %151, %158, %159 : vector<64x128xi1>, vector<64x128xf32>
    %cst_82 = arith.constant dense<0.000000e+00> : vector<64xf32>
    %161 = vector.multi_reduction <add>, %160, %cst_82 [1] : vector<64x128xf32> to vector<64xf32>
    %162 = vector.shape_cast %161 : vector<64xf32> to vector<64x1xf32>
    %163 = math.log %162 : vector<64x1xf32>
    %164 = vector.broadcast %163 : vector<64x1xf32> to vector<64x128xf32>
    %165 = arith.subf %157, %164 : vector<64x128xf32>
    %c0_83 = arith.constant 0 : index
    %c0_84 = arith.constant 0 : index
    %166 = vector.load %arg10[%c0_83, %c0_84] : memref<64x128xf32, #tpu.memory_space<vmem>>, vector<64x128xf32>
    tpu.vector_store %arg10[%c0_83, %c0_84], %165 {strides = array<i32>} : memref<64x128xf32, #tpu.memory_space<vmem>>, vector<64x128xf32>,
    return
  }
}

</mosaic_0001>

<bundles_post_ra>
// kernel: deeper_gcn_forward.1
= control target key start
LH: loop header
LB: loop body
LE: loop exit
PB: predicated region body
PF: predicated region fallthrough
CT: control target
= control target key end

     0   :  { %vm61_vm0 = vcmask 130048   ;;  %vm207_vm1 = vcmask 261120   ;;  %vm325_vm2 = vcmask 523264   ;;  %s2548_s21 = smov 96   ;;  %s3510_s2 = inlined_call_operand.vmem [shape: f32[16,32], index: 2, kind: input, shape index: {}]   ;;  %s3511_s0 = inlined_call_operand.vmem [shape: f32[64,16], index: 0, kind: input, shape index: {}]   ;;  %s3512_s3 = inlined_call_operand.vmem [shape: f32[1,32], index: 3, kind: input, shape index: {}]   ;;  %s3513_s1 = inlined_call_operand.vmem [shape: bf16[64,64], index: 1, kind: input, shape index: {}]   ;;  %s3514_s4 = inlined_call_operand.vmem [shape: f32[3,32,32], index: 4, kind: input, shape index: {}]   ;;  %s3515_s5 = inlined_call_operand.vmem [shape: f32[3,1,32], index: 5, kind: input, shape index: {}]   ;;  %s3516_s6 = inlined_call_operand.vmem [shape: f32[3,1,32], index: 6, kind: input, shape index: {}]   ;;  %s3517_s7 = inlined_call_operand.vmem [shape: f32[3,1,32], index: 7, kind: input, shape index: {}]   ;;  %s3518_s8 = inlined_call_operand.vmem [shape: f32[32,128], index: 8, kind: input, shape index: {}]   ;;  %s3519_s9 = inlined_call_operand.vmem [shape: f32[1,128], index: 9, kind: input, shape index: {}]   ;;  %s3520_s10 = inlined_call_operand.vmem [shape: f32[64,128], index: 10, kind: output, shape index: {}]  }
   0x1   :  { %v52_v0 = vld [vmem:[%s3510_s2] sm:$0xff]  ;;  %v53_v1 = vld [vmem:[%s3510_s2 + $0x8] sm:$0xff]  ;;  %v46_v5 = vld [vmem:[%s3511_s0 + $0x10] sm:$0xff] }
   0x2   :  { %v44_v2 = vld [vmem:[%s3511_s0] sm:$0xff]  ;;  %v2307_v3 = vpack.c.bf16 %v53_v1, %v52_v0  ;;  %v45_v4 = vld [vmem:[%s3511_s0 + $0x8] sm:$0xff]  ;;  %v47_v6 = vld [vmem:[%s3511_s0 + $0x18] sm:$0xff] }
   0x3   :  { %2167 = vmatprep.mubr.msk.f32.mxu0 %vm61_vm0, %v44_v2  ;;  %v48_v7 = vld [vmem:[%s3511_s0 + $0x20] sm:$0xff]  ;;  %v49_v8 = vld [vmem:[%s3511_s0 + $0x28] sm:$0xff]  ;;  %v50_v9 = vld [vmem:[%s3511_s0 + $0x30] sm:$0xff] }
   0x4   :  { %2308 = vmatprep.subr.bf16.mxu0 %v2307_v3  ;;  %v51_v10 = vld [vmem:[%s3511_s0 + $0x38] sm:$0xff]  ;;  %v2000_v13 = vld [vmem:[%s3512_s3] ss:$0 sm:$0xff]  ;;  %s2547_s0 = smov 32  }
   0x5   :  { %2310 = vmatpush3.bf16.msra.mxu0 %v2307_v3 }
   0x8   :  { %2168 = vmatmul.mubr.msk.f32.vlgmr.msra.gmra.mrb[0].mxu0 %vm61_vm0, %v45_v4 }
   0x9   :  { %2170 = vmatprep.mubr.msk.f32.mxu0 %vm61_vm0, %v46_v5 }
   0xc   :  { %2171 = vmatmul.mubr.msk.f32.gmra.mrb[2].mxu0 %vm61_vm0, %v47_v6 }
   0xd   :  { %2173 = vmatprep.mubr.msk.f32.mxu0 %vm61_vm0, %v48_v7 }
  0x10   :  { %2174 = vmatmul.mubr.msk.f32.gmra.mrb[4].mxu0 %vm61_vm0, %v49_v8 }
  0x11   :  { %2176 = vmatprep.mubr.msk.f32.mxu0 %vm61_vm0, %v50_v9 }
  0x14   :  { %2177 = vmatmul.mubr.msk.f32.gmra.mrb[6].mxu0 %vm61_vm0, %v51_v10 }
  0xdb   :  { %v2169_v11 = vpop.f32.mrb[0].mxu0 }
  0xdc   :  { %v152_v12 = vpop.f32.mrb[1].mxu0  ;;  %v2645_v16 = vadd.f32 %v2169_v11, %v2000_v13 }
  0xdd   :  { %v2647_v17 = vadd.f32 %v2000_v13, %v152_v12 }
  0xde   :  { %v192_v23 = vmax.f32 %v2645_v16, 0.0 }
  0xdf   :  { %v2172_v14 = vpop.f32.mrb[2].mxu0  ;;  %v191_v24 = vmax.f32 %v2647_v17, 0.0 }
  0xe0   :  { %v162_v15 = vpop.f32.mrb[3].mxu0  ;;  %v2649_v18 = vadd.f32 %v2172_v14, %v2000_v13  ;;  %v2667_v34 = vadd.f32 1e-07, %v192_v23 }
  0xe1   :  { %v2651_v19 = vadd.f32 %v2000_v13, %v162_v15  ;;  %v2669_v35 = vadd.f32 1e-07, %v191_v24 }
  0xe2   :  { %v194_v26 = vmax.f32 %v2649_v18, 0.0  ;;  %v209_v45 = vsel %vm207_vm1, %v2667_v34, -inf }
  0xe3   :  { %v2175_v20 = vpop.f32.mrb[4].mxu0  ;;  %v193_v28 = vmax.f32 %v2651_v19, 0.0  ;;  %v208_v46 = vsel %vm207_vm1, %v2669_v35, -inf }
  0xe4   :  { %v2653_v21 = vadd.f32 %v2175_v20, %v2000_v13  ;;  %v172_v22 = vpop.f32.mrb[5].mxu0  ;;  %v2673_v38 = vadd.f32 1e-07, %v194_v26 }
  0xe5   :  { %v2657_v25 = vadd.f32 %v2000_v13, %v172_v22  ;;  %v2676_v40 = vadd.f32 1e-07, %v193_v28 }
  0xe6   :  { %v196_v27 = vmax.f32 %v2653_v21, 0.0  ;;  %v211_v48 = vsel %vm207_vm1, %v2673_v38, -inf }
  0xe7   :  { %v195_v29 = vmax.f32 %v2657_v25, 0.0  ;;  %v2178_v30 = vpop.f32.mrb[6].mxu0  ;;  %v210_v52 = vsel %vm207_vm1, %v2676_v40, -inf }
  0xe8   :  { %v2663_v31 = vadd.f32 1e-07, %v196_v27  ;;  %v2665_v32 = vadd.f32 %v2178_v30, %v2000_v13  ;;  %v182_v33 = vpop.f32.mrb[7].mxu0 }
  0xe9   :  { %v203_v36 = vadd.f32 1e-07, %v195_v29  ;;  %v2671_v37 = vadd.f32 %v2000_v13, %v182_v33 }
  0xea   :  { %v198_v39 = vmax.f32 %v2665_v32, 0.0  ;;  %v214_v41 = vsel %vm207_vm1, %v2663_v31, -inf }
  0xeb   :  { %v212_v42 = vsel %vm207_vm1, %v203_v36, -inf  ;;  %v197_v43 = vmax.f32 %v2671_v37, 0.0  ;;  %v215_v49 = vmax.f32 %v209_v45, %v214_v41 }
  0xec   :  { %v206_v44 = vadd.f32 1e-07, %v198_v39  ;;  %v213_v50 = vmax.f32 %v208_v46, %v212_v42 }
  0xed   :  { %v205_v47 = vadd.f32 1e-07, %v197_v43 }
  0xee   :  { %v218_v51 = vsel %vm207_vm1, %v206_v44, -inf  ;;  %v220_v56 = vmax.f32 %v213_v50, %v215_v49 }
  0xef   :  { %v219_v53 = vmax.f32 %v211_v48, %v218_v51  ;;  %v216_v54 = vsel %vm207_vm1, %v205_v47, -inf }
  0xf0   :  { %v217_v55 = vmax.f32 %v210_v52, %v216_v54 }
  0xf2   :  { %v221_v57 = vmax.f32 %v217_v55, %v219_v53 }
  0xf4   :  { %v222_v58 = vmax.f32 %v220_v56, %v221_v57 }
  0xf6   :  { %v223_v59 = vrot.slane %v222_v58, 4 }
  0xf8   :  { %v224_v60 = vmax.f32 %v222_v58, %v223_v59 }
  0xfa   :  { %v225_v61 = vrot.slane %v224_v60, 2 }
  0xfc   :  { %v226_v62 = vmax.f32 %v224_v60, %v225_v61 }
  0xfe   :  { %v227_v63 = vrot.slane %v226_v62, 1 }
 0x100   :  { %v228_v0 = vmax.f32 %v226_v62, %v227_v63 }
 0x102   :  { %v235_v1 = vsub.f32 %v205_v47, %v228_v0  ;;  %v233_v2 = vsub.f32 %v203_v36, %v228_v0  ;;  %v234_v3 = vsub.f32 %v2663_v31, %v228_v0  ;;  %v229_v4 = vsub.f32 %v2669_v35, %v228_v0 }
 0x103   :  { %v230_v5 = vsub.f32 %v2667_v34, %v228_v0  ;;  %v236_v6 = vsub.f32 %v206_v44, %v228_v0  ;;  %v231_v10 = vsub.f32 %v2676_v40, %v228_v0  ;;  %v232_v12 = vsub.f32 %v2673_v38, %v228_v0 }
 0x104   :  { %v249_v7 = vmul.f32 1.442695, %v235_v1  ;;  %v245_v8 = vmul.f32 1.442695, %v233_v2  ;;  %v247_v9 = vmul.f32 1.442695, %v234_v3 }
 0x105   :  { %v237_v11 = vmul.f32 1.442695, %v229_v4  ;;  %v239_v13 = vmul.f32 1.442695, %v230_v5  ;;  %v251_v14 = vmul.f32 1.442695, %v236_v6 }
 0x106   :  { %2417 = vpow2.f32 %v249_v7  ;;  %v241_v15 = vmul.f32 1.442695, %v231_v10  ;;  %v243_v20 = vmul.f32 1.442695, %v232_v12  ;;  %v2724_v6 = vld [vmem:[%s3513_s1 + $0x8] sm:$0xff]   ;;  %v2729_v7 = vld [vmem:[%s3513_s1 + $0x10] sm:$0xff]  }
 0x107   :  { %2419 = vpow2.f32 %v245_v8  ;;  %v2738_v8 = vld [vmem:[%s3513_s1 + $0x18] sm:$0xff]  }
 0x108   :  { %2421 = vpow2.f32 %v247_v9 }
 0x109   :  { %2423 = vpow2.f32 %v237_v11 }
 0x10a   :  { %2425 = vpow2.f32 %v239_v13 }
 0x10b   :  { %2427 = vpow2.f32 %v251_v14 }
 0x10c   :  { %2429 = vpow2.f32 %v241_v15 }
 0x10d   :  { %2431 = vpow2.f32 %v243_v20 }
 0x110   :  { %v2418_v22 = vpop.eup %2417 }
 0x111   :  { %v2420_v23 = vpop.eup %2419  ;;  %v259_v24 = vmul.f32 %v2418_v22, %v205_v47 }
 0x112   :  { %v2422_v26 = vpop.eup %2421  ;;  %v257_v27 = vmul.f32 %v2420_v23, %v203_v36 }
 0x113   :  { %v2424_v28 = vpop.eup %2423  ;;  %v2363_v29 = vpack.i.bf16 %v2422_v26, %v2420_v23  ;;  %v258_v30 = vmul.f32 %v2422_v26, %v2663_v31 }
 0x114   :  { %v2426_v33 = vpop.eup %2425  ;;  %v253_v39 = vmul.f32 %v2424_v28, %v2669_v35 }
 0x115   :  { %v2428_v41 = vpop.eup %2427  ;;  %2364 = vrot.lane.b32.xlu1 %v2363_v29, %s2547_s0  ;;  %v2353_v42 = vpack.i.bf16 %v2426_v33, %v2424_v28  ;;  %v254_v43 = vmul.f32 %v2426_v33, %v2667_v34  ;;  %v2709_v34 = vld [vmem:[%s3513_s1] sm:$0xff]  }
 0x116   :  { %v2430_v45 = vpop.eup %2429  ;;  %v260_v46 = vmul.f32 %v2428_v41, %v206_v44  ;;  %v2368_v36 = vpack.i.bf16 %v2428_v41, %v2418_v22  ;;  %2187 = vmatprep.mubr.msk.bf16.mxu1 %vm325_vm2, %v2709_v34 }
 0x117   :  { %v2432_v48 = vpop.eup %2431  ;;  %2354 = vrot.lane.b32.xlu0 %v2353_v42, %s2547_s0  ;;  %v255_v47 = vmul.f32 %v2430_v45, %v2676_v40 }
 0x118   :  { %v256_v31 = vmul.f32 %v2432_v48, %v2673_v38  ;;  %v2358_v35 = vpack.i.bf16 %v2432_v48, %v2430_v45 }
 0x119   :  { %2369 = vrot.lane.b32.xlu1 %v2368_v36, %s2547_s0 }
 0x11b   :  { %2359 = vrot.lane.b32.xlu0 %v2358_v35, %s2547_s0 }
 0x187   :  { %v2365_v44 = vpop.permute.xlu1 %2364 }
 0x188   :  { %v2367_v49 = vunpack.i.h.bf16 %v2365_v44  ;;  %v2366_v50 = vunpack.i.l.bf16 %v2365_v44 }
 0x189   :  { %v2355_v40 = vpop.permute.xlu0 %2354 }
 0x18a   :  { %v2357_v51 = vunpack.i.h.bf16 %v2355_v40  ;;  %v2356_v38 = vunpack.i.l.bf16 %v2355_v40  ;;  %v297_v52 = vsel %vm207_vm1, %v257_v27, %v2366_v50  ;;  %v298_v53 = vsel %vm207_vm1, %v258_v30, %v2367_v49  ;;  %v547_v40 = vld [vmem:[%s3514_s4] sm:$0xff] }
 0x18b   :  { %v2370_v54 = vpop.permute.xlu1 %2369  ;;  %v303_v55 = vpack.c.bf16 %v298_v53, %v297_v52 }
 0x18c   :  { %v2372_v56 = vunpack.i.h.bf16 %v2370_v54  ;;  %v2371_v57 = vunpack.i.l.bf16 %v2370_v54  ;;  %v293_v58 = vsel %vm207_vm1, %v253_v39, %v2356_v38  ;;  %v294_v59 = vsel %vm207_vm1, %v254_v43, %v2357_v51  ;;  %v548_v51 = vld [vmem:[%s3514_s4 + $0x8] sm:$0xff]  ;;  %v549_v38 = vld [vmem:[%s3514_s4 + $0x10] sm:$0xff]  ;;  %v550_v54 = vld [vmem:[%s3514_s4 + $0x18] sm:$0xff] }
 0x18d   :  { %v2360_v60 = vpop.permute.xlu0 %2359  ;;  %v301_v61 = vpack.c.bf16 %v294_v59, %v293_v58  ;;  %v2311_v53 = vpack.c.bf16 %v548_v51, %v547_v40 }
 0x18e   :  { %v2362_v62 = vunpack.i.h.bf16 %v2360_v60  ;;  %v2361_v63 = vunpack.i.l.bf16 %v2360_v60  ;;  %v299_v0 = vsel %vm207_vm1, %v259_v24, %v2371_v57  ;;  %v300_v1 = vsel %vm207_vm1, %v260_v46, %v2372_v56 }
 0x18f   :  { %2179 = vmatprep.subr.bf16.mxu1 %v301_v61  ;;  %v304_v2 = vpack.c.bf16 %v300_v1, %v299_v0  ;;  %v2315_v56 = vpack.c.bf16 %v550_v54, %v549_v38  ;;  %2312 = vmatprep.subr.bf16.mxu0 %v2311_v53 }
 0x190   :  { %2180 = vmatpush3.bf16.msra.mxu1 %v301_v61  ;;  %v295_v3 = vsel %vm207_vm1, %v255_v47, %v2361_v63  ;;  %v296_v4 = vsel %vm207_vm1, %v256_v31, %v2362_v62  ;;  %2314 = vmatpush3.bf16.msra.mxu0 %v2311_v53 }
 0x191   :  { %v302_v5 = vpack.c.bf16 %v296_v4, %v295_v3  ;;  %2316 = vmatprep.subr.bf16.mxu0 %v2315_v56 }
 0x193   :  { %2181 = vmatprep.subr.bf16.mxu1 %v302_v5 }
 0x194   :  { %2182 = vmatpush3.bf16.msra.mxu1 %v302_v5  ;;  %2318 = vmatpush3.bf16.msra.mxu0 %v2315_v56 }
 0x195   :  { %2183 = vmatprep.subr.bf16.mxu1 %v303_v55 }
 0x198   :  { %2184 = vmatpush3.bf16.msra.mxu1 %v303_v55 }
 0x199   :  { %2185 = vmatprep.subr.bf16.mxu1 %v304_v2 }
 0x19c   :  { %2186 = vmatpush3.bf16.msra.mxu1 %v304_v2 }
 0x19f   :  { %2188 = vmatmul.mubr.msk.bf16.vlgmr.msra.gmra.mrb[0].mxu1 %vm325_vm2, %v2724_v6 }
 0x1a0   :  { %2191 = vmatprep.mubr.msk.bf16.mxu1 %vm325_vm2, %v2729_v7 }
 0x1a7   :  { %2192 = vmatmul.mubr.msk.bf16.gmra.mrb[4].mxu1 %vm325_vm2, %v2738_v8 }
 0x1a8   :  { %2223 = vmatprep.mubr.msk.bf16.mxu1 %vm325_vm2, %v2709_v34 }
 0x272   :  { %v2744_v9 = vpop.f32.mrb[0].mxu1 }
 0x273   :  { %v2746_v10 = vpop.f32.mrb[1].mxu1  ;;  %vm405_vm3 = vcmp.gt.f32.partialorder %v2744_v9, 0.0 }
 0x274   :  { %vm403_vm4 = vcmp.gt.f32.partialorder %v2746_v10, 0.0  ;;  %v2750_v11 = vpop.f32.mrb[2].mxu1  ;;  %v413_v14 = vsel %vm405_vm3, %v2744_v9, 1.0 }
 0x275   :  { %v411_v12 = vsel %vm403_vm4, %v2746_v10, 1.0  ;;  %v2755_v13 = vpop.f32.mrb[3].mxu1  ;;  %vm406_vm5 = vcmp.gt.f32.partialorder %v2750_v11, 0.0 }
 0x276   :  { %2433 = vrcp.f32 %v411_v12  ;;  %vm404_vm6 = vcmp.gt.f32.partialorder %v2755_v13, 0.0  ;;  %v414_v20 = vsel %vm406_vm5, %v2750_v11, 1.0 }
 0x277   :  { %v412_v15 = vsel %vm404_vm6, %v2755_v13, 1.0 }
 0x278   :  { %2435 = vrcp.f32 %v412_v15 }
 0x279   :  { %2437 = vrcp.f32 %v413_v14 }
 0x27a   :  { %v2768_v22 = vpop.f32.mrb[4].mxu1  ;;  %2439 = vrcp.f32 %v414_v20 }
 0x27b   :  { %v2770_v23 = vpop.f32.mrb[5].mxu1  ;;  %vm409_vm7 = vcmp.gt.f32.partialorder %v2768_v22, 0.0 }
 0x27c   :  { %vm407_vm8 = vcmp.gt.f32.partialorder %v2770_v23, 0.0  ;;  %v2774_v24 = vpop.f32.mrb[6].mxu1  ;;  %v417_v28 = vsel %vm409_vm7, %v2768_v22, 1.0 }
 0x27d   :  { %v415_v26 = vsel %vm407_vm8, %v2770_v23, 1.0  ;;  %v2779_v27 = vpop.f32.mrb[7].mxu1  ;;  %vm410_vm9 = vcmp.gt.f32.partialorder %v2774_v24, 0.0 }
 0x27e   :  { %2441 = vrcp.f32 %v415_v26  ;;  %vm408_vm10 = vcmp.gt.f32.partialorder %v2779_v27, 0.0  ;;  %v418_v33 = vsel %vm410_vm9, %v2774_v24, 1.0 }
 0x27f   :  { %v416_v29 = vsel %vm408_vm10, %v2779_v27, 1.0 }
 0x280   :  { %v2434_v30 = vpop.eup %2433  ;;  %2443 = vrcp.f32 %v416_v29 }
 0x281   :  { %435 = vrot.lane.b32.xlu0 %v2434_v30, %s2548_s21  ;;  %2445 = vrcp.f32 %v417_v28 }
 0x282   :  { %v2436_v39 = vpop.eup %2435  ;;  %2447 = vrcp.f32 %v418_v33 }
 0x283   :  { %437 = vrot.lane.b32.xlu1 %v2436_v39, %s2548_s21  ;;  %v2438_v41 = vpop.eup %2437 }
 0x284   :  { %v2440_v42 = vpop.eup %2439 }
 0x285   :  { %439 = vrot.lane.b32.xlu0 %v2438_v41, %s2548_s21 }
 0x287   :  { %441 = vrot.lane.b32.xlu1 %v2440_v42, %s2548_s21 }
 0x288   :  { %v2442_v43 = vpop.eup %2441 }
 0x289   :  { %443 = vrot.lane.b32.xlu0 %v2442_v43, %s2548_s21 }
 0x28a   :  { %v2444_v45 = vpop.eup %2443 }
 0x28b   :  { %445 = vrot.lane.b32.xlu1 %v2444_v45, %s2548_s21  ;;  %v2446_v46 = vpop.eup %2445 }
 0x28c   :  { %v2448_v48 = vpop.eup %2447 }
 0x28d   :  { %447 = vrot.lane.b32.xlu0 %v2446_v46, %s2548_s21 }
 0x28f   :  { %449 = vrot.lane.b32.xlu1 %v2448_v48, %s2548_s21 }
 0x2f3   :  { %v436_v36 = vpop.permute.xlu0 %435 }
 0x2f4   :  { %v459_v47 = vmul.f32 %v436_v36, %v2746_v10 }
 0x2f5   :  { %v438_v31 = vpop.permute.xlu1 %437 }
 0x2f6   :  { %v460_v35 = vmul.f32 %v438_v31, %v2755_v13  ;;  %475 = vrot.lane.b32.xlu0 %v459_v47, %s2547_s0  ;;  %v2027_v47 = vld [vmem:[%s3517_s7] ss:$0 sm:$0xff] }
 0x2f7   :  { %v440_v44 = vpop.permute.xlu0 %439 }
 0x2f8   :  { %v461_v49 = vmul.f32 %v2744_v9, %v440_v44  ;;  %477 = vrot.lane.b32.xlu1 %v460_v35, %s2547_s0 }
 0x2f9   :  { %v442_v50 = vpop.permute.xlu1 %441 }
 0x2fa   :  { %v462_v52 = vmul.f32 %v2750_v11, %v442_v50  ;;  %479 = vrot.lane.b32.xlu0 %v461_v49, %s2547_s0 }
 0x2fb   :  { %v444_v55 = vpop.permute.xlu0 %443 }
 0x2fc   :  { %v463_v57 = vmul.f32 %v444_v55, %v2770_v23  ;;  %481 = vrot.lane.b32.xlu1 %v462_v52, %s2547_s0 }
 0x2fd   :  { %v446_v58 = vpop.permute.xlu1 %445 }
 0x2fe   :  { %v464_v59 = vmul.f32 %v446_v58, %v2779_v27  ;;  %483 = vrot.lane.b32.xlu0 %v463_v57, %s2547_s0 }
 0x2ff   :  { %v448_v60 = vpop.permute.xlu0 %447 }
 0x300   :  { %v465_v61 = vmul.f32 %v2768_v22, %v448_v60  ;;  %485 = vrot.lane.b32.xlu1 %v464_v59, %s2547_s0 }
 0x301   :  { %v450_v62 = vpop.permute.xlu1 %449 }
 0x302   :  { %v466_v63 = vmul.f32 %v2774_v24, %v450_v62  ;;  %487 = vrot.lane.b32.xlu0 %v465_v61, %s2547_s0 }
 0x304   :  { %489 = vrot.lane.b32.xlu1 %v466_v63, %s2547_s0 }
 0x368   :  { %v476_v0 = vpop.permute.xlu0 %475 }
 0x369   :  { %v499_v1 = vsel %vm403_vm4, %v476_v0, 0.0 }
 0x36a   :  { %515 = vrot.lane.b32.xlu0 %v499_v1, %s2548_s21  ;;  %v478_v2 = vpop.permute.xlu1 %477 }
 0x36b   :  { %v500_v3 = vsel %vm404_vm6, %v478_v2, 0.0 }
 0x36c   :  { %v480_v4 = vpop.permute.xlu0 %479  ;;  %517 = vrot.lane.b32.xlu1 %v500_v3, %s2548_s21 }
 0x36d   :  { %v501_v5 = vsel %vm405_vm3, %v480_v4, 0.0 }
 0x36e   :  { %519 = vrot.lane.b32.xlu0 %v501_v5, %s2548_s21  ;;  %v482_v12 = vpop.permute.xlu1 %481 }
 0x36f   :  { %v502_v14 = vsel %vm406_vm5, %v482_v12, 0.0 }
 0x370   :  { %v484_v10 = vpop.permute.xlu0 %483  ;;  %521 = vrot.lane.b32.xlu1 %v502_v14, %s2548_s21 }
 0x371   :  { %v503_v15 = vsel %vm407_vm8, %v484_v10, 0.0 }
 0x372   :  { %523 = vrot.lane.b32.xlu0 %v503_v15, %s2548_s21  ;;  %v486_v13 = vpop.permute.xlu1 %485 }
 0x373   :  { %v504_v20 = vsel %vm408_vm10, %v486_v13, 0.0 }
 0x374   :  { %v488_v9 = vpop.permute.xlu0 %487  ;;  %525 = vrot.lane.b32.xlu1 %v504_v20, %s2548_s21 }
 0x375   :  { %v505_v26 = vsel %vm409_vm7, %v488_v9, 0.0 }
 0x376   :  { %527 = vrot.lane.b32.xlu0 %v505_v26, %s2548_s21  ;;  %v490_v11 = vpop.permute.xlu1 %489 }
 0x377   :  { %v506_v28 = vsel %vm410_vm9, %v490_v11, 0.0 }
 0x378   :  { %529 = vrot.lane.b32.xlu1 %v506_v28, %s2548_s21 }
 0x3dc   :  { %v516_v23 = vpop.permute.xlu0 %515 }
 0x3dd   :  { %v539_v29 = vadd.f32 %v516_v23, %v2647_v17 }
 0x3de   :  { %v518_v30 = vpop.permute.xlu1 %517 }
 0x3df   :  { %v540_v27 = vadd.f32 %v518_v30, %v2645_v16  ;;  %2203 = vmatprep.mubr.msk.f32.mxu0 %vm207_vm1, %v539_v29 }
 0x3e0   :  { %v520_v33 = vpop.permute.xlu0 %519 }
 0x3e1   :  { %v541_v22 = vadd.f32 %v520_v33, %v2651_v19  ;;  %2204 = vmatmul.mubr.msk.f32.vlgmr.msra.gmra.mrb[8].mxu0 %vm207_vm1, %v540_v27 }
 0x3e2   :  { %v522_v39 = vpop.permute.xlu1 %521 }
 0x3e3   :  { %v542_v41 = vadd.f32 %v522_v39, %v2649_v18  ;;  %2206 = vmatprep.mubr.msk.f32.mxu0 %vm207_vm1, %v541_v22 }
 0x3e4   :  { %v524_v24 = vpop.permute.xlu0 %523 }
 0x3e5   :  { %v543_v42 = vadd.f32 %v524_v24, %v2657_v25  ;;  %2207 = vmatmul.mubr.msk.f32.gmra.mrb[10].mxu0 %vm207_vm1, %v542_v41  ;;  %v2017_v25 = vld [vmem:[%s3515_s5] ss:$0 sm:$0xff] }
 0x3e6   :  { %v526_v17 = vpop.permute.xlu1 %525 }
 0x3e7   :  { %v544_v16 = vadd.f32 %v526_v17, %v2653_v21  ;;  %2209 = vmatprep.mubr.msk.f32.mxu0 %vm207_vm1, %v543_v42  ;;  %v2026_v21 = vld [vmem:[%s3516_s6] ss:$0 sm:$0xff] }
 0x3e8   :  { %v528_v43 = vpop.permute.xlu0 %527 }
 0x3e9   :  { %v545_v19 = vadd.f32 %v528_v43, %v2671_v37  ;;  %2210 = vmatmul.mubr.msk.f32.gmra.mrb[12].mxu0 %vm207_vm1, %v544_v16 }
 0x3ea   :  { %v530_v45 = vpop.permute.xlu1 %529 }
 0x3eb   :  { %v546_v18 = vadd.f32 %v530_v45, %v2665_v32  ;;  %2212 = vmatprep.mubr.msk.f32.mxu0 %vm207_vm1, %v545_v19 }
 0x3ed   :  { %2213 = vmatmul.mubr.msk.f32.gmra.mrb[14].mxu0 %vm207_vm1, %v546_v18 }
 0x4b4   :  { %v2205_v46 = vpop.f32.mrb[8].mxu0 }
 0x4b5   :  { %v2874_v48 = vadd.f32 %v2205_v46, %v2017_v25  ;;  %v648_v37 = vpop.f32.mrb[9].mxu0 }
 0x4b6   :  { %v2876_v36 = vadd.f32 %v2017_v25, %v648_v37 }
 0x4b7   :  { %v695_v32 = vmul.f32 %v2026_v21, %v2874_v48 }
 0x4b8   :  { %v694_v31 = vmul.f32 %v2026_v21, %v2876_v36  ;;  %v2208_v35 = vpop.f32.mrb[10].mxu0 }
 0x4b9   :  { %v2883_v44 = vadd.f32 %v2208_v35, %v2017_v25  ;;  %v658_v49 = vpop.f32.mrb[11].mxu0  ;;  %v2887_v40 = vadd.f32 %v2027_v47, %v695_v32 }
 0x4ba   :  { %v2885_v50 = vadd.f32 %v2017_v25, %v658_v49  ;;  %v2890_v38 = vadd.f32 %v2027_v47, %v694_v31 }
 0x4bb   :  { %v697_v51 = vmul.f32 %v2026_v21, %v2883_v44  ;;  %v718_v59 = vmax.f32 %v2887_v40, 0.0 }
 0x4bc   :  { %v696_v52 = vmul.f32 %v2026_v21, %v2885_v50  ;;  %v2211_v53 = vpop.f32.mrb[12].mxu0  ;;  %v717_v61 = vmax.f32 %v2890_v38, 0.0 }
 0x4bd   :  { %v2893_v54 = vadd.f32 %v2027_v47, %v697_v51  ;;  %v2895_v55 = vadd.f32 %v2211_v53, %v2017_v25  ;;  %v668_v56 = vpop.f32.mrb[13].mxu0  ;;  %v726_v14 = vmax.f32 %v718_v59, 0.0 }
 0x4be   :  { %v2897_v57 = vadd.f32 %v2027_v47, %v696_v52  ;;  %v2899_v58 = vadd.f32 %v2017_v25, %v668_v56  ;;  %v725_v13 = vmax.f32 %v717_v61, 0.0 }
 0x4bf   :  { %v699_v60 = vmul.f32 %v2026_v21, %v2895_v55  ;;  %v720_v0 = vmax.f32 %v2893_v54, 0.0  ;;  %v2935_v27 = vadd.f32 1e-07, %v726_v14 }
 0x4c0   :  { %v698_v62 = vmul.f32 %v2026_v21, %v2899_v58  ;;  %v2214_v63 = vpop.f32.mrb[14].mxu0  ;;  %v719_v4 = vmax.f32 %v2897_v57, 0.0  ;;  %v2940_v39 = vadd.f32 1e-07, %v725_v13 }
 0x4c1   :  { %v2906_v1 = vadd.f32 %v2027_v47, %v699_v60  ;;  %v2908_v2 = vadd.f32 %v2214_v63, %v2017_v25  ;;  %v678_v3 = vpop.f32.mrb[15].mxu0  ;;  %v728_v26 = vmax.f32 %v720_v0, 0.0 }
 0x4c2   :  { %v2911_v5 = vadd.f32 %v2027_v47, %v698_v62  ;;  %v2913_v12 = vadd.f32 %v2017_v25, %v678_v3  ;;  %v727_v23 = vmax.f32 %v719_v4, 0.0  ;;  %v742_v25 = vsel %vm207_vm1, %v2935_v27, -inf }
 0x4c3   :  { %v722_v10 = vmax.f32 %v2906_v1, 0.0  ;;  %v701_v15 = vmul.f32 %v2026_v21, %v2908_v2  ;;  %v736_v42 = vadd.f32 1e-07, %v728_v26  ;;  %v741_v46 = vsel %vm207_vm1, %v2940_v39, -inf  ;;  %v2037_v1 = vld [vmem:[%s3515_s5 + $0x1] ss:$0 sm:$0xff] }
 0x4c4   :  { %v721_v20 = vmax.f32 %v2911_v5, 0.0  ;;  %v700_v9 = vmul.f32 %v2026_v21, %v2913_v12  ;;  %v735_v16 = vadd.f32 1e-07, %v727_v23 }
 0x4c5   :  { %v730_v11 = vmax.f32 %v722_v10, 0.0  ;;  %v2927_v28 = vadd.f32 %v2027_v47, %v701_v15  ;;  %v744_v37 = vsel %vm207_vm1, %v736_v42, -inf }
 0x4c6   :  { %v729_v29 = vmax.f32 %v721_v20, 0.0  ;;  %v2933_v30 = vadd.f32 %v2027_v47, %v700_v9  ;;  %v743_v35 = vsel %vm207_vm1, %v735_v16, -inf }
 0x4c7   :  { %v2937_v33 = vadd.f32 1e-07, %v730_v11  ;;  %v724_v22 = vmax.f32 %v2927_v28, 0.0 }
 0x4c8   :  { %v2942_v41 = vadd.f32 1e-07, %v729_v29  ;;  %v723_v24 = vmax.f32 %v2933_v30, 0.0  ;;  %v2047_v30 = vld [vmem:[%s3516_s6 + $0x1] ss:$0 sm:$0xff] }
 0x4c9   :  { %v732_v17 = vmax.f32 %v724_v22, 0.0  ;;  %v747_v43 = vsel %vm207_vm1, %v2937_v33, -inf }
 0x4ca   :  { %v745_v19 = vsel %vm207_vm1, %v2942_v41, -inf  ;;  %v731_v45 = vmax.f32 %v723_v24, 0.0  ;;  %v748_v32 = vmax.f32 %v742_v25, %v747_v43 }
 0x4cb   :  { %v740_v18 = vadd.f32 1e-07, %v732_v17  ;;  %v746_v47 = vmax.f32 %v741_v46, %v745_v19 }
 0x4cc   :  { %v739_v21 = vadd.f32 1e-07, %v731_v45 }
 0x4cd   :  { %v751_v31 = vsel %vm207_vm1, %v740_v18, -inf  ;;  %v753_v53 = vmax.f32 %v746_v47, %v748_v32 }
 0x4ce   :  { %v752_v49 = vmax.f32 %v744_v37, %v751_v31  ;;  %v749_v51 = vsel %vm207_vm1, %v739_v21, -inf }
 0x4cf   :  { %v750_v52 = vmax.f32 %v743_v35, %v749_v51 }
 0x4d1   :  { %v754_v56 = vmax.f32 %v750_v52, %v752_v49 }
 0x4d3   :  { %v755_v60 = vmax.f32 %v753_v53, %v754_v56 }
 0x4d5   :  { %v756_v62 = vrot.slane %v755_v60, 4 }
 0x4d7   :  { %v757_v63 = vmax.f32 %v755_v60, %v756_v62 }
 0x4d9   :  { %v758_v3 = vrot.slane %v757_v63, 2 }
 0x4db   :  { %v759_v14 = vmax.f32 %v757_v63, %v758_v3 }
 0x4dd   :  { %v760_v15 = vrot.slane %v759_v14, 1 }
 0x4df   :  { %v761_v13 = vmax.f32 %v759_v14, %v760_v15 }
 0x4e1   :  { %v768_v9 = vsub.f32 %v739_v21, %v761_v13  ;;  %v764_v26 = vsub.f32 %v735_v16, %v761_v13  ;;  %v765_v11 = vsub.f32 %v736_v42, %v761_v13  ;;  %v762_v23 = vsub.f32 %v2940_v39, %v761_v13 }
 0x4e2   :  { %v763_v29 = vsub.f32 %v2935_v27, %v761_v13  ;;  %v769_v17 = vsub.f32 %v740_v18, %v761_v13  ;;  %v766_v25 = vsub.f32 %v2942_v41, %v761_v13  ;;  %v767_v37 = vsub.f32 %v2937_v33, %v761_v13 }
 0x4e3   :  { %v782_v43 = vmul.f32 1.442695, %v768_v9  ;;  %v774_v19 = vmul.f32 1.442695, %v764_v26  ;;  %v776_v45 = vmul.f32 1.442695, %v765_v11 }
 0x4e4   :  { %v770_v46 = vmul.f32 1.442695, %v762_v23  ;;  %v772_v32 = vmul.f32 1.442695, %v763_v29  ;;  %v784_v47 = vmul.f32 1.442695, %v769_v17 }
 0x4e5   :  { %2449 = vpow2.f32 %v782_v43  ;;  %v778_v31 = vmul.f32 1.442695, %v766_v25  ;;  %v780_v35 = vmul.f32 1.442695, %v767_v37 }
 0x4e6   :  { %2451 = vpow2.f32 %v774_v19 }
 0x4e7   :  { %2453 = vpow2.f32 %v776_v45 }
 0x4e8   :  { %2455 = vpow2.f32 %v770_v46 }
 0x4e9   :  { %2457 = vpow2.f32 %v772_v32 }
 0x4ea   :  { %2459 = vpow2.f32 %v784_v47 }
 0x4eb   :  { %2461 = vpow2.f32 %v778_v31 }
 0x4ec   :  { %2463 = vpow2.f32 %v780_v35 }
 0x4ef   :  { %v2450_v49 = vpop.eup %2449 }
 0x4f0   :  { %v2452_v51 = vpop.eup %2451  ;;  %v792_v52 = vmul.f32 %v2450_v49, %v739_v21 }
 0x4f1   :  { %v2454_v53 = vpop.eup %2453  ;;  %v788_v56 = vmul.f32 %v2452_v51, %v735_v16 }
 0x4f2   :  { %v2456_v60 = vpop.eup %2455  ;;  %v2378_v62 = vpack.i.bf16 %v2454_v53, %v2452_v51  ;;  %v789_v63 = vmul.f32 %v2454_v53, %v736_v42 }
 0x4f3   :  { %v2458_v3 = vpop.eup %2457  ;;  %v786_v14 = vmul.f32 %v2456_v60, %v2940_v39 }
 0x4f4   :  { %v2460_v15 = vpop.eup %2459  ;;  %2379 = vrot.lane.b32.xlu1 %v2378_v62, %s2547_s0  ;;  %v2373_v13 = vpack.i.bf16 %v2458_v3, %v2456_v60  ;;  %v787_v9 = vmul.f32 %v2458_v3, %v2935_v27 }
 0x4f5   :  { %v2462_v26 = vpop.eup %2461  ;;  %v793_v11 = vmul.f32 %v2460_v15, %v740_v18  ;;  %v2388_v21 = vpack.i.bf16 %v2460_v15, %v2450_v49 }
 0x4f6   :  { %v2464_v23 = vpop.eup %2463  ;;  %2374 = vrot.lane.b32.xlu0 %v2373_v13, %s2547_s0  ;;  %v790_v16 = vmul.f32 %v2462_v26, %v2942_v41 }
 0x4f7   :  { %v791_v29 = vmul.f32 %v2464_v23, %v2937_v33  ;;  %v2383_v42 = vpack.i.bf16 %v2464_v23, %v2462_v26 }
 0x4f8   :  { %2389 = vrot.lane.b32.xlu1 %v2388_v21, %s2547_s0 }
 0x4fa   :  { %2384 = vrot.lane.b32.xlu0 %v2383_v42, %s2547_s0 }
 0x566   :  { %v2380_v39 = vpop.permute.xlu1 %2379 }
 0x567   :  { %v2382_v17 = vunpack.i.h.bf16 %v2380_v39  ;;  %v2381_v43 = vunpack.i.l.bf16 %v2380_v39 }
 0x568   :  { %v2375_v19 = vpop.permute.xlu0 %2374 }
 0x569   :  { %v2377_v27 = vunpack.i.h.bf16 %v2375_v19  ;;  %v2376_v45 = vunpack.i.l.bf16 %v2375_v19  ;;  %v828_v18 = vsel %vm207_vm1, %v788_v56, %v2381_v43  ;;  %v829_v25 = vsel %vm207_vm1, %v789_v63, %v2382_v17 }
 0x56a   :  { %v2390_v46 = vpop.permute.xlu1 %2389  ;;  %v835_v37 = vpack.c.bf16 %v829_v25, %v828_v18 }
 0x56b   :  { %v2392_v41 = vunpack.i.h.bf16 %v2390_v46  ;;  %v2391_v32 = vunpack.i.l.bf16 %v2390_v46  ;;  %v826_v33 = vsel %vm207_vm1, %v786_v14, %v2376_v45  ;;  %v827_v47 = vsel %vm207_vm1, %v787_v9, %v2377_v27 }
 0x56c   :  { %v2385_v31 = vpop.permute.xlu0 %2384  ;;  %v834_v35 = vpack.c.bf16 %v827_v47, %v826_v33 }
 0x56d   :  { %v2387_v49 = vunpack.i.h.bf16 %v2385_v31  ;;  %v2386_v51 = vunpack.i.l.bf16 %v2385_v31  ;;  %v832_v53 = vsel %vm207_vm1, %v792_v52, %v2391_v32  ;;  %v833_v60 = vsel %vm207_vm1, %v793_v11, %v2392_v41 }
 0x56e   :  { %2215 = vmatprep.subr.bf16.mxu1 %v834_v35  ;;  %v837_v56 = vpack.c.bf16 %v833_v60, %v832_v53 }
 0x56f   :  { %2216 = vmatpush3.bf16.msra.mxu1 %v834_v35  ;;  %v830_v62 = vsel %vm207_vm1, %v790_v16, %v2386_v51  ;;  %v831_v63 = vsel %vm207_vm1, %v791_v29, %v2387_v49  ;;  %v2032_v35 = vld [vmem:[%s3514_s4 + $0x20] sm:$0xff]  ;;  %v2033_v49 = vld [vmem:[%s3514_s4 + $0x28] sm:$0xff]  ;;  %v2034_v51 = vld [vmem:[%s3514_s4 + $0x30] sm:$0xff] }
 0x570   :  { %2217 = vmatprep.subr.bf16.mxu1 %v835_v37  ;;  %v836_v3 = vpack.c.bf16 %v831_v63, %v830_v62  ;;  %v2319_v60 = vpack.c.bf16 %v2033_v49, %v2032_v35 }
 0x572   :  { %2320 = vmatprep.subr.bf16.mxu0 %v2319_v60 }
 0x573   :  { %2218 = vmatpush3.bf16.msra.mxu1 %v835_v37  ;;  %2322 = vmatpush3.bf16.msra.mxu0 %v2319_v60  ;;  %v2049_v60 = vld [vmem:[%s3517_s7 + $0x1] ss:$0 sm:$0xff] }
 0x574   :  { %2219 = vmatprep.subr.bf16.mxu1 %v836_v3 }
 0x577   :  { %2220 = vmatpush3.bf16.msra.mxu1 %v836_v3 }
 0x578   :  { %2221 = vmatprep.subr.bf16.mxu1 %v837_v56 }
 0x57b   :  { %2222 = vmatpush3.bf16.msra.mxu1 %v837_v56  ;;  %v2035_v56 = vld [vmem:[%s3514_s4 + $0x38] sm:$0xff] }
 0x57c   :  { %v2323_v63 = vpack.c.bf16 %v2035_v56, %v2034_v51 }
 0x57e   :  { %2224 = vmatmul.mubr.msk.bf16.vlgmr.msra.gmra.mrb[8].mxu1 %vm325_vm2, %v2724_v6  ;;  %2324 = vmatprep.subr.bf16.mxu0 %v2323_v63 }
 0x57f   :  { %2227 = vmatprep.mubr.msk.bf16.mxu1 %vm325_vm2, %v2729_v7  ;;  %2326 = vmatpush3.bf16.msra.mxu0 %v2323_v63 }
 0x586   :  { %2228 = vmatmul.mubr.msk.bf16.gmra.mrb[12].mxu1 %vm325_vm2, %v2738_v8 }
 0x587   :  { %2263 = vmatprep.mubr.msk.bf16.mxu1 %vm325_vm2, %v2729_v7 }
 0x651   :  { %v2989_v52 = vpop.f32.mrb[8].mxu1 }
 0x652   :  { %v2991_v14 = vpop.f32.mrb[9].mxu1  ;;  %vm905_vm11 = vcmp.gt.f32.partialorder %v2989_v52, 0.0 }
 0x653   :  { %vm903_vm12 = vcmp.gt.f32.partialorder %v2991_v14, 0.0  ;;  %v2995_v15 = vpop.f32.mrb[10].mxu1  ;;  %v913_v7 = vsel %vm905_vm11, %v2989_v52, 1.0 }
 0x654   :  { %v911_v6 = vsel %vm903_vm12, %v2991_v14, 1.0  ;;  %v3000_v13 = vpop.f32.mrb[11].mxu1  ;;  %vm906_vm13 = vcmp.gt.f32.partialorder %v2995_v15, 0.0 }
 0x655   :  { %2465 = vrcp.f32 %v911_v6  ;;  %vm904_vm14 = vcmp.gt.f32.partialorder %v3000_v13, 0.0  ;;  %v914_v9 = vsel %vm906_vm13, %v2995_v15, 1.0 }
 0x656   :  { %v912_v8 = vsel %vm904_vm14, %v3000_v13, 1.0 }
 0x657   :  { %2467 = vrcp.f32 %v912_v8 }
 0x658   :  { %2469 = vrcp.f32 %v913_v7 }
 0x659   :  { %v3013_v26 = vpop.f32.mrb[12].mxu1  ;;  %2471 = vrcp.f32 %v914_v9 }
 0x65a   :  { %v3015_v11 = vpop.f32.mrb[13].mxu1  ;;  %vm909_vm15 = vcmp.gt.f32.partialorder %v3013_v26, 0.0 }
 0x65b   :  { %vm907_vm0 = vcmp.gt.f32.partialorder %v3015_v11, 0.0  ;;  %v3019_v23 = vpop.f32.mrb[14].mxu1  ;;  %v917_v29 = vsel %vm909_vm15, %v3013_v26, 1.0 }
 0x65c   :  { %v915_v21 = vsel %vm907_vm0, %v3015_v11, 1.0  ;;  %v3024_v16 = vpop.f32.mrb[15].mxu1  ;;  %vm910_vm3 = vcmp.gt.f32.partialorder %v3019_v23, 0.0 }
 0x65d   :  { %2473 = vrcp.f32 %v915_v21  ;;  %vm908_vm4 = vcmp.gt.f32.partialorder %v3024_v16, 0.0  ;;  %v918_v17 = vsel %vm910_vm3, %v3019_v23, 1.0 }
 0x65e   :  { %v916_v42 = vsel %vm908_vm4, %v3024_v16, 1.0 }
 0x65f   :  { %v2466_v39 = vpop.eup %2465  ;;  %2475 = vrcp.f32 %v916_v42 }
 0x660   :  { %935 = vrot.lane.b32.xlu0 %v2466_v39, %s2548_s21  ;;  %2477 = vrcp.f32 %v917_v29 }
 0x661   :  { %v2468_v43 = vpop.eup %2467  ;;  %2479 = vrcp.f32 %v918_v17 }
 0x662   :  { %937 = vrot.lane.b32.xlu1 %v2468_v43, %s2548_s21  ;;  %v2470_v19 = vpop.eup %2469 }
 0x663   :  { %v2472_v27 = vpop.eup %2471 }
 0x664   :  { %939 = vrot.lane.b32.xlu0 %v2470_v19, %s2548_s21 }
 0x666   :  { %941 = vrot.lane.b32.xlu1 %v2472_v27, %s2548_s21 }
 0x667   :  { %v2474_v45 = vpop.eup %2473 }
 0x668   :  { %943 = vrot.lane.b32.xlu0 %v2474_v45, %s2548_s21 }
 0x669   :  { %v2476_v18 = vpop.eup %2475 }
 0x66a   :  { %945 = vrot.lane.b32.xlu1 %v2476_v18, %s2548_s21  ;;  %v2478_v25 = vpop.eup %2477 }
 0x66b   :  { %v2480_v46 = vpop.eup %2479 }
 0x66c   :  { %947 = vrot.lane.b32.xlu0 %v2478_v25, %s2548_s21 }
 0x66e   :  { %949 = vrot.lane.b32.xlu1 %v2480_v46, %s2548_s21 }
 0x6d2   :  { %v936_v37 = vpop.permute.xlu0 %935 }
 0x6d3   :  { %v959_v41 = vmul.f32 %v936_v37, %v2991_v14 }
 0x6d4   :  { %v938_v32 = vpop.permute.xlu1 %937 }
 0x6d5   :  { %v960_v33 = vmul.f32 %v938_v32, %v3000_v13  ;;  %975 = vrot.lane.b32.xlu0 %v959_v41, %s2547_s0 }
 0x6d6   :  { %v940_v47 = vpop.permute.xlu0 %939 }
 0x6d7   :  { %v961_v31 = vmul.f32 %v2989_v52, %v940_v47  ;;  %977 = vrot.lane.b32.xlu1 %v960_v33, %s2547_s0 }
 0x6d8   :  { %v942_v53 = vpop.permute.xlu1 %941 }
 0x6d9   :  { %v962_v62 = vmul.f32 %v2995_v15, %v942_v53  ;;  %979 = vrot.lane.b32.xlu0 %v961_v31, %s2547_s0 }
 0x6da   :  { %v944_v3 = vpop.permute.xlu0 %943 }
 0x6db   :  { %v963_v6 = vmul.f32 %v944_v3, %v3015_v11  ;;  %981 = vrot.lane.b32.xlu1 %v962_v62, %s2547_s0 }
 0x6dc   :  { %v946_v7 = vpop.permute.xlu1 %945 }
 0x6dd   :  { %v964_v8 = vmul.f32 %v946_v7, %v3024_v16  ;;  %983 = vrot.lane.b32.xlu0 %v963_v6, %s2547_s0 }
 0x6de   :  { %v948_v9 = vpop.permute.xlu0 %947 }
 0x6df   :  { %v965_v21 = vmul.f32 %v3013_v26, %v948_v9  ;;  %985 = vrot.lane.b32.xlu1 %v964_v8, %s2547_s0 }
 0x6e0   :  { %v950_v29 = vpop.permute.xlu1 %949 }
 0x6e1   :  { %v966_v42 = vmul.f32 %v3019_v23, %v950_v29  ;;  %987 = vrot.lane.b32.xlu0 %v965_v21, %s2547_s0 }
 0x6e3   :  { %989 = vrot.lane.b32.xlu1 %v966_v42, %s2547_s0 }
 0x747   :  { %v976_v39 = vpop.permute.xlu0 %975 }
 0x748   :  { %v999_v17 = vsel %vm903_vm12, %v976_v39, 0.0 }
 0x749   :  { %1015 = vrot.lane.b32.xlu0 %v999_v17, %s2548_s21  ;;  %v978_v43 = vpop.permute.xlu1 %977 }
 0x74a   :  { %v1000_v19 = vsel %vm904_vm14, %v978_v43, 0.0 }
 0x74b   :  { %v980_v27 = vpop.permute.xlu0 %979  ;;  %1017 = vrot.lane.b32.xlu1 %v1000_v19, %s2548_s21 }
 0x74c   :  { %v1001_v45 = vsel %vm905_vm11, %v980_v27, 0.0 }
 0x74d   :  { %1019 = vrot.lane.b32.xlu0 %v1001_v45, %s2548_s21  ;;  %v982_v18 = vpop.permute.xlu1 %981 }
 0x74e   :  { %v1002_v25 = vsel %vm906_vm13, %v982_v18, 0.0 }
 0x74f   :  { %v984_v14 = vpop.permute.xlu0 %983  ;;  %1021 = vrot.lane.b32.xlu1 %v1002_v25, %s2548_s21 }
 0x750   :  { %v1003_v46 = vsel %vm907_vm0, %v984_v14, 0.0 }
 0x751   :  { %1023 = vrot.lane.b32.xlu0 %v1003_v46, %s2548_s21  ;;  %v986_v13 = vpop.permute.xlu1 %985 }
 0x752   :  { %v1004_v37 = vsel %vm908_vm4, %v986_v13, 0.0 }
 0x753   :  { %v988_v52 = vpop.permute.xlu0 %987  ;;  %1025 = vrot.lane.b32.xlu1 %v1004_v37, %s2548_s21 }
 0x754   :  { %v1005_v41 = vsel %vm909_vm15, %v988_v52, 0.0 }
 0x755   :  { %1027 = vrot.lane.b32.xlu0 %v1005_v41, %s2548_s21  ;;  %v990_v15 = vpop.permute.xlu1 %989 }
 0x756   :  { %v1006_v32 = vsel %vm910_vm3, %v990_v15, 0.0 }
 0x757   :  { %1029 = vrot.lane.b32.xlu1 %v1006_v32, %s2548_s21 }
 0x7bb   :  { %v1016_v11 = vpop.permute.xlu0 %1015 }
 0x7bc   :  { %v1039_v33 = vadd.f32 %v1016_v11, %v717_v61 }
 0x7bd   :  { %v1018_v16 = vpop.permute.xlu1 %1017 }
 0x7be   :  { %v1040_v47 = vadd.f32 %v1018_v16, %v718_v59  ;;  %2239 = vmatprep.mubr.msk.f32.mxu0 %vm207_vm1, %v1039_v33 }
 0x7bf   :  { %v1020_v26 = vpop.permute.xlu0 %1019 }
 0x7c0   :  { %v1041_v31 = vadd.f32 %v1020_v26, %v719_v4  ;;  %2240 = vmatmul.mubr.msk.f32.vlgmr.msra.gmra.mrb[16].mxu0 %vm207_vm1, %v1040_v47 }
 0x7c1   :  { %v1022_v23 = vpop.permute.xlu1 %1021 }
 0x7c2   :  { %v1042_v35 = vadd.f32 %v1022_v23, %v720_v0  ;;  %2242 = vmatprep.mubr.msk.f32.mxu0 %vm207_vm1, %v1041_v31 }
 0x7c3   :  { %v1024_v38 = vpop.permute.xlu0 %1023 }
 0x7c4   :  { %v1043_v61 = vadd.f32 %v1024_v38, %v721_v20  ;;  %2243 = vmatmul.mubr.msk.f32.gmra.mrb[18].mxu0 %vm207_vm1, %v1042_v35 }
 0x7c5   :  { %v1026_v40 = vpop.permute.xlu1 %1025 }
 0x7c6   :  { %v1044_v59 = vadd.f32 %v1026_v40, %v722_v10  ;;  %2245 = vmatprep.mubr.msk.f32.mxu0 %vm207_vm1, %v1043_v61 }
 0x7c7   :  { %v1028_v57 = vpop.permute.xlu0 %1027 }
 0x7c8   :  { %v1045_v4 = vadd.f32 %v1028_v57, %v723_v24  ;;  %2246 = vmatmul.mubr.msk.f32.gmra.mrb[20].mxu0 %vm207_vm1, %v1044_v59 }
 0x7c9   :  { %v1030_v54 = vpop.permute.xlu1 %1029 }
 0x7ca   :  { %v1046_v0 = vadd.f32 %v1030_v54, %v724_v22  ;;  %2248 = vmatprep.mubr.msk.f32.mxu0 %vm207_vm1, %v1045_v4 }
 0x7cc   :  { %2249 = vmatmul.mubr.msk.f32.gmra.mrb[22].mxu0 %vm207_vm1, %v1046_v0 }
 0x7cd   :  { %2259 = vmatprep.mubr.msk.bf16.mxu0 %vm325_vm2, %v2709_v34 }
 0x893   :  { %v2241_v5 = vpop.f32.mrb[16].mxu0 }
 0x894   :  { %v1156_v10 = vadd.f32 %v2241_v5, %v2037_v1  ;;  %v1150_v20 = vpop.f32.mrb[17].mxu0 }
 0x895   :  { %v1151_v28 = vadd.f32 %v2037_v1, %v1150_v20 }
 0x896   :  { %v3130_v22 = vadd.f32 %v1156_v10, %v2874_v48 }
 0x897   :  { %v3133_v24 = vadd.f32 %v1151_v28, %v2876_v36  ;;  %v2244_v49 = vpop.f32.mrb[18].mxu0 }
 0x898   :  { %v1206_v34 = vmul.f32 %v2047_v30, %v3130_v22  ;;  %v1166_v51 = vadd.f32 %v2244_v49, %v2037_v1  ;;  %v1160_v53 = vpop.f32.mrb[19].mxu0 }
 0x899   :  { %v1205_v56 = vmul.f32 %v2047_v30, %v3133_v24  ;;  %v1161_v62 = vadd.f32 %v2037_v1, %v1160_v53 }
 0x89a   :  { %v3141_v63 = vadd.f32 %v1166_v51, %v2883_v44  ;;  %v3146_v3 = vadd.f32 %v2049_v60, %v1206_v34 }
 0x89b   :  { %v3144_v48 = vadd.f32 %v1161_v62, %v2885_v50  ;;  %v2247_v36 = vpop.f32.mrb[20].mxu0  ;;  %v3149_v9 = vadd.f32 %v2049_v60, %v1205_v56 }
 0x89c   :  { %v1208_v6 = vmul.f32 %v2047_v30, %v3141_v63  ;;  %v1176_v7 = vadd.f32 %v2247_v36, %v2037_v1  ;;  %v1170_v8 = vpop.f32.mrb[21].mxu0  ;;  %v1230_v43 = vmax.f32 %v3146_v3, 0.0 }
 0x89d   :  { %v1207_v21 = vmul.f32 %v2047_v30, %v3144_v48  ;;  %v1171_v29 = vadd.f32 %v2037_v1, %v1170_v8  ;;  %v1229_v18 = vmax.f32 %v3149_v9, 0.0 }
 0x89e   :  { %v3152_v42 = vadd.f32 %v2049_v60, %v1208_v6  ;;  %v3155_v44 = vadd.f32 %v1176_v7, %v2895_v55  ;;  %v1238_v41 = vmax.f32 %v1230_v43, 0.0 }
 0x89f   :  { %v3157_v39 = vadd.f32 %v2049_v60, %v1207_v21  ;;  %v3160_v50 = vadd.f32 %v1171_v29, %v2899_v58  ;;  %v2250_v17 = vpop.f32.mrb[22].mxu0  ;;  %v1237_v11 = vmax.f32 %v1229_v18, 0.0 }
 0x8a0   :  { %v1210_v19 = vmul.f32 %v2047_v30, %v3155_v44  ;;  %v1186_v27 = vadd.f32 %v2250_v17, %v2037_v1  ;;  %v1180_v45 = vpop.f32.mrb[23].mxu0  ;;  %v1232_v55 = vmax.f32 %v3152_v42, 0.0  ;;  %v3198_v35 = vadd.f32 1e-07, %v1238_v41 }
 0x8a1   :  { %v1209_v25 = vmul.f32 %v2047_v30, %v3160_v50  ;;  %v1181_v14 = vadd.f32 %v2037_v1, %v1180_v45  ;;  %v1231_v58 = vmax.f32 %v3157_v39, 0.0  ;;  %v1245_v40 = vadd.f32 1e-07, %v1237_v11 }
 0x8a2   :  { %v3167_v46 = vadd.f32 %v2049_v60, %v1210_v19  ;;  %v3170_v13 = vadd.f32 %v1186_v27, %v2908_v2  ;;  %v1240_v16 = vmax.f32 %v1232_v55, 0.0 }
 0x8a3   :  { %v3173_v37 = vadd.f32 %v2049_v60, %v1209_v25  ;;  %v3176_v52 = vadd.f32 %v1181_v14, %v2913_v12  ;;  %v1239_v26 = vmax.f32 %v1231_v58, 0.0  ;;  %v1253_v28 = vsel %vm207_vm1, %v1245_v40, -inf }
 0x8a4   :  { %v1234_v15 = vmax.f32 %v3167_v46, 0.0  ;;  %v1212_v32 = vmul.f32 %v2047_v30, %v3170_v13  ;;  %v1248_v4 = vadd.f32 1e-07, %v1240_v16  ;;  %v1749_v46 = vld [vmem:[%s3518_s8] sm:$0xff] }
 0x8a5   :  { %v1233_v2 = vmax.f32 %v3173_v37, 0.0  ;;  %v1211_v33 = vmul.f32 %v2047_v30, %v3176_v52  ;;  %v1247_v0 = vadd.f32 1e-07, %v1239_v26  ;;  %v1254_v30 = vsel %vm207_vm1, %v3198_v35, -inf  ;;  %v1750_v37 = vld [vmem:[%s3518_s8 + $0x8] sm:$0xff] }
 0x8a6   :  { %v1242_v12 = vmax.f32 %v1234_v15, 0.0  ;;  %v3190_v47 = vadd.f32 %v2049_v60, %v1212_v32  ;;  %v1256_v34 = vsel %vm207_vm1, %v1248_v4, -inf }
 0x8a7   :  { %v1241_v31 = vmax.f32 %v1233_v2, 0.0  ;;  %v3196_v23 = vadd.f32 %v2049_v60, %v1211_v33  ;;  %v1255_v56 = vsel %vm207_vm1, %v1247_v0, -inf }
 0x8a8   :  { %v3200_v38 = vadd.f32 1e-07, %v1242_v12  ;;  %v1236_v61 = vmax.f32 %v3190_v47, 0.0  ;;  %v1752_v47 = vld [vmem:[%s3518_s8 + $0x18] sm:$0xff] }
 0x8a9   :  { %v3203_v59 = vadd.f32 1e-07, %v1241_v31  ;;  %v1235_v57 = vmax.f32 %v3196_v23, 0.0 }
 0x8aa   :  { %v1244_v54 = vmax.f32 %v1236_v61, 0.0  ;;  %v1259_v1 = vsel %vm207_vm1, %v3200_v38, -inf }
 0x8ab   :  { %v1257_v5 = vsel %vm207_vm1, %v3203_v59, -inf  ;;  %v1243_v10 = vmax.f32 %v1235_v57, 0.0  ;;  %v1260_v51 = vmax.f32 %v1254_v30, %v1259_v1 }
 0x8ac   :  { %v1252_v20 = vadd.f32 1e-07, %v1244_v54  ;;  %v1258_v53 = vmax.f32 %v1253_v28, %v1257_v5 }
 0x8ad   :  { %v1251_v49 = vadd.f32 1e-07, %v1243_v10 }
 0x8ae   :  { %v1263_v60 = vsel %vm207_vm1, %v1252_v20, -inf  ;;  %v1265_v7 = vmax.f32 %v1258_v53, %v1260_v51 }
 0x8af   :  { %v1264_v62 = vmax.f32 %v1256_v34, %v1263_v60  ;;  %v1261_v36 = vsel %vm207_vm1, %v1251_v49, -inf }
 0x8b0   :  { %v1262_v6 = vmax.f32 %v1255_v56, %v1261_v36 }
 0x8b2   :  { %v1266_v8 = vmax.f32 %v1262_v6, %v1264_v62 }
 0x8b4   :  { %v1267_v21 = vmax.f32 %v1265_v7, %v1266_v8 }
 0x8b6   :  { %v1268_v29 = vrot.slane %v1267_v21, 4 }
 0x8b8   :  { %v1269_v17 = vmax.f32 %v1267_v21, %v1268_v29 }
 0x8ba   :  { %v1270_v19 = vrot.slane %v1269_v17, 2 }
 0x8bc   :  { %v1271_v27 = vmax.f32 %v1269_v17, %v1270_v19 }
 0x8be   :  { %v1272_v45 = vrot.slane %v1271_v27, 1 }
 0x8c0   :  { %v1273_v25 = vmax.f32 %v1271_v27, %v1272_v45 }
 0x8c2   :  { %v1280_v14 = vsub.f32 %v1251_v49, %v1273_v25  ;;  %v1276_v41 = vsub.f32 %v1247_v0, %v1273_v25  ;;  %v1277_v32 = vsub.f32 %v1248_v4, %v1273_v25  ;;  %v1274_v11 = vsub.f32 %v1245_v40, %v1273_v25 }
 0x8c3   :  { %v1275_v33 = vsub.f32 %v3198_v35, %v1273_v25  ;;  %v1281_v16 = vsub.f32 %v1252_v20, %v1273_v25  ;;  %v1278_v31 = vsub.f32 %v3203_v59, %v1273_v25  ;;  %v1279_v5 = vsub.f32 %v3200_v38, %v1273_v25 }
 0x8c4   :  { %v1286_v12 = vmul.f32 1.442695, %v1276_v41  ;;  %v1288_v26 = vmul.f32 1.442695, %v1277_v32  ;;  %v1282_v54 = vmul.f32 1.442695, %v1274_v11 }
 0x8c5   :  { %v1284_v1 = vmul.f32 1.442695, %v1275_v33  ;;  %v1294_v10 = vmul.f32 1.442695, %v1280_v14  ;;  %v1296_v30 = vmul.f32 1.442695, %v1281_v16 }
 0x8c6   :  { %2481 = vpow2.f32 %v1286_v12  ;;  %v1290_v28 = vmul.f32 1.442695, %v1278_v31  ;;  %v1292_v34 = vmul.f32 1.442695, %v1279_v5 }
 0x8c7   :  { %2483 = vpow2.f32 %v1288_v26 }
 0x8c8   :  { %2485 = vpow2.f32 %v1282_v54 }
 0x8c9   :  { %2487 = vpow2.f32 %v1284_v1 }
 0x8ca   :  { %2489 = vpow2.f32 %v1294_v10 }
 0x8cb   :  { %2491 = vpow2.f32 %v1296_v30 }
 0x8cc   :  { %2493 = vpow2.f32 %v1290_v28 }
 0x8cd   :  { %2495 = vpow2.f32 %v1292_v34 }
 0x8d0   :  { %v2482_v51 = vpop.eup %2481 }
 0x8d1   :  { %v2484_v53 = vpop.eup %2483  ;;  %v1300_v60 = vmul.f32 %v2482_v51, %v1247_v0 }
 0x8d2   :  { %v2486_v56 = vpop.eup %2485  ;;  %v2398_v62 = vpack.i.bf16 %v2484_v53, %v2482_v51  ;;  %v1301_v36 = vmul.f32 %v2484_v53, %v1248_v4 }
 0x8d3   :  { %v2488_v6 = vpop.eup %2487  ;;  %v1298_v7 = vmul.f32 %v2486_v56, %v1245_v40 }
 0x8d4   :  { %v2490_v8 = vpop.eup %2489  ;;  %2399 = vrot.lane.b32.xlu1 %v2398_v62, %s2547_s0  ;;  %v2393_v21 = vpack.i.bf16 %v2488_v6, %v2486_v56  ;;  %v1299_v29 = vmul.f32 %v2488_v6, %v3198_v35  ;;  %v2545_v62 = vld [vmem:[%s3513_s1 + $0x8] sm:$0xff]  }
 0x8d5   :  { %v2492_v17 = vpop.eup %2491  ;;  %v1304_v19 = vmul.f32 %v2490_v8, %v1251_v49 }
 0x8d6   :  { %v2494_v27 = vpop.eup %2493  ;;  %2394 = vrot.lane.b32.xlu0 %v2393_v21, %s2547_s0  ;;  %v2408_v45 = vpack.i.bf16 %v2492_v17, %v2490_v8  ;;  %v1305_v25 = vmul.f32 %v2492_v17, %v1252_v20 }
 0x8d7   :  { %v2496_v14 = vpop.eup %2495  ;;  %v1302_v0 = vmul.f32 %v2494_v27, %v3203_v59 }
 0x8d8   :  { %2409 = vrot.lane.b32.xlu1 %v2408_v45, %s2547_s0  ;;  %v2403_v4 = vpack.i.bf16 %v2496_v14, %v2494_v27  ;;  %v1303_v40 = vmul.f32 %v2496_v14, %v3200_v38 }
 0x8da   :  { %2404 = vrot.lane.b32.xlu0 %v2403_v4, %s2547_s0 }
 0x946   :  { %v2400_v41 = vpop.permute.xlu1 %2399 }
 0x947   :  { %v2402_v32 = vunpack.i.h.bf16 %v2400_v41  ;;  %v2401_v35 = vunpack.i.l.bf16 %v2400_v41 }
 0x948   :  { %v2395_v11 = vpop.permute.xlu0 %2394 }
 0x949   :  { %v1341_v49 = vsel %vm207_vm1, %v1301_v36, %v2402_v32  ;;  %v1340_v33 = vsel %vm207_vm1, %v1300_v60, %v2401_v35  ;;  %v2397_v16 = vunpack.i.h.bf16 %v2395_v11  ;;  %v2396_v20 = vunpack.i.l.bf16 %v2395_v11  ;;  %v2546_v36 = vld [vmem:[%s3513_s1 + $0x18] sm:$0xff]  }
 0x94a   :  { %v1347_v12 = vpack.c.bf16 %v1341_v49, %v1340_v33  ;;  %v2410_v26 = vpop.permute.xlu1 %2409 }
 0x94b   :  { %v1339_v59 = vsel %vm207_vm1, %v1299_v29, %v2397_v16  ;;  %v1338_v31 = vsel %vm207_vm1, %v1298_v7, %v2396_v20  ;;  %v2412_v54 = vunpack.i.h.bf16 %v2410_v26  ;;  %v2411_v38 = vunpack.i.l.bf16 %v2410_v26 }
 0x94c   :  { %v1346_v1 = vpack.c.bf16 %v1339_v59, %v1338_v31  ;;  %v2405_v5 = vpop.permute.xlu0 %2404 }
 0x94d   :  { %v1345_v10 = vsel %vm207_vm1, %v1305_v25, %v2412_v54  ;;  %v1344_v30 = vsel %vm207_vm1, %v1304_v19, %v2411_v38  ;;  %v2407_v28 = vunpack.i.h.bf16 %v2405_v5  ;;  %v2406_v34 = vunpack.i.l.bf16 %v2405_v5 }
 0x94e   :  { %v1349_v51 = vpack.c.bf16 %v1345_v10, %v1344_v30  ;;  %2251 = vmatprep.subr.bf16.mxu0 %v1346_v1  ;;  %2343 = vmatprep.subr.bf16.mxu1 %v1346_v1  ;;  %v2054_v10 = vld [vmem:[%s3514_s4 + $0x40] sm:$0xff]  ;;  %v2055_v30 = vld [vmem:[%s3514_s4 + $0x48] sm:$0xff] }
 0x94f   :  { %v1343_v53 = vsel %vm207_vm1, %v1303_v40, %v2407_v28  ;;  %v1342_v60 = vsel %vm207_vm1, %v1302_v0, %v2406_v34  ;;  %2252 = vmatpush3.bf16.msra.mxu0 %v1346_v1  ;;  %2347 = vmatpush3.bf16.msra.mxu1 %v1346_v1  ;;  %v2327_v34 = vpack.c.bf16 %v2055_v30, %v2054_v10 }
 0x950   :  { %v1348_v56 = vpack.c.bf16 %v1343_v53, %v1342_v60  ;;  %2253 = vmatprep.subr.bf16.mxu0 %v1347_v12  ;;  %2344 = vmatprep.subr.bf16.mxu1 %v1347_v12 }
 0x953   :  { %2254 = vmatpush3.bf16.msra.mxu0 %v1347_v12  ;;  %2348 = vmatpush3.bf16.msra.mxu1 %v1347_v12 }
 0x954   :  { %2255 = vmatprep.subr.bf16.mxu0 %v1348_v56  ;;  %2345 = vmatprep.subr.bf16.mxu1 %v1348_v56 }
 0x957   :  { %2256 = vmatpush3.bf16.msra.mxu0 %v1348_v56  ;;  %2349 = vmatpush3.bf16.msra.mxu1 %v1348_v56 }
 0x958   :  { %2257 = vmatprep.subr.bf16.mxu0 %v1349_v51  ;;  %2346 = vmatprep.subr.bf16.mxu1 %v1349_v51 }
 0x95b   :  { %2258 = vmatpush3.bf16.msra.mxu0 %v1349_v51  ;;  %2350 = vmatpush3.bf16.msra.mxu1 %v1349_v51 }
 0x95c   :  { %2328 = vmatprep.subr.bf16.mxu0 %v2327_v34 }
 0x95e   :  { %2260 = vmatmul.mubr.msk.bf16.vlgmr.msra.gmra.mrb[24].mxu0 %vm325_vm2, %v2545_v62  ;;  %2264 = vmatmul.mubr.msk.bf16.vlgmr.msra.gmra.mrb[16].mxu1 %vm325_vm2, %v2546_v36 }
 0x95f   :  { %2330 = vmatpush3.bf16.msra.mxu0 %v2327_v34 }
 0xa31   :  { %v3247_v6 = vpop.f32.mrb[24].mxu0  ;;  %v3249_v7 = vpop.f32.mrb[16].mxu1 }
 0xa32   :  { %v3251_v8 = vpop.f32.mrb[25].mxu0  ;;  %v3253_v21 = vpop.f32.mrb[17].mxu1  ;;  %vm1417_vm5 = vcmp.gt.f32.partialorder %v3247_v6, 0.0  ;;  %vm1421_vm10 = vcmp.gt.f32.partialorder %v3249_v7, 0.0 }
 0xa33   :  { %vm1415_vm6 = vcmp.gt.f32.partialorder %v3251_v8, 0.0  ;;  %v3257_v29 = vpop.f32.mrb[26].mxu0  ;;  %v3259_v17 = vpop.f32.mrb[18].mxu1  ;;  %vm1419_vm8 = vcmp.gt.f32.partialorder %v3253_v21, 0.0  ;;  %v1425_v25 = vsel %vm1417_vm5, %v3247_v6, 1.0  ;;  %v1429_v41 = vsel %vm1421_vm10, %v3249_v7, 1.0 }
 0xa34   :  { %v1423_v19 = vsel %vm1415_vm6, %v3251_v8, 1.0  ;;  %vm1418_vm2 = vcmp.gt.f32.partialorder %v3257_v29, 0.0  ;;  %v3265_v27 = vpop.f32.mrb[27].mxu0  ;;  %v3267_v45 = vpop.f32.mrb[19].mxu1  ;;  %v1427_v4 = vsel %vm1419_vm8, %v3253_v21, 1.0  ;;  %vm1422_vm11 = vcmp.gt.f32.partialorder %v3259_v17, 0.0 }
 0xa35   :  { %2497 = vrcp.f32 %v1423_v19  ;;  %vm1416_vm7 = vcmp.gt.f32.partialorder %v3265_v27, 0.0  ;;  %v1426_v0 = vsel %vm1418_vm2, %v3257_v29, 1.0  ;;  %vm1420_vm9 = vcmp.gt.f32.partialorder %v3267_v45, 0.0 }
 0xa36   :  { %v1424_v14 = vsel %vm1416_vm7, %v3265_v27, 1.0  ;;  %v1428_v40 = vsel %vm1420_vm9, %v3267_v45, 1.0  ;;  %v1430_v35 = vsel %vm1422_vm11, %v3259_v17, 1.0 }
 0xa37   :  { %2499 = vrcp.f32 %v1424_v14 }
 0xa38   :  { %2501 = vrcp.f32 %v1425_v25 }
 0xa39   :  { %2503 = vrcp.f32 %v1426_v0  ;;  %v2056_v0 = vld [vmem:[%s3514_s4 + $0x50] sm:$0xff] }
 0xa3a   :  { %2505 = vrcp.f32 %v1427_v4  ;;  %v2057_v4 = vld [vmem:[%s3514_s4 + $0x58] sm:$0xff] }
 0xa3b   :  { %2507 = vrcp.f32 %v1428_v40  ;;  %v2331_v40 = vpack.c.bf16 %v2057_v4, %v2056_v0 }
 0xa3c   :  { %2509 = vrcp.f32 %v1429_v41 }
 0xa3d   :  { %2511 = vrcp.f32 %v1430_v35  ;;  %2332 = vmatprep.subr.bf16.mxu0 %v2331_v40 }
 0xa3e   :  { %2334 = vmatpush3.bf16.msra.mxu0 %v2331_v40 }
 0xa3f   :  { %v2498_v32 = vpop.eup %2497 }
 0xa40   :  { %1447 = vrot.lane.b32.xlu0 %v2498_v32, %s2548_s21 }
 0xa41   :  { %v2500_v11 = vpop.eup %2499 }
 0xa42   :  { %1449 = vrot.lane.b32.xlu1 %v2500_v11, %s2548_s21  ;;  %v2502_v49 = vpop.eup %2501 }
 0xa43   :  { %v2504_v33 = vpop.eup %2503 }
 0xa44   :  { %1451 = vrot.lane.b32.xlu0 %v2502_v49, %s2548_s21  ;;  %v2506_v16 = vpop.eup %2505 }
 0xa45   :  { %v2508_v20 = vpop.eup %2507 }
 0xa46   :  { %1453 = vrot.lane.b32.xlu1 %v2504_v33, %s2548_s21  ;;  %v2510_v12 = vpop.eup %2509 }
 0xa47   :  { %v2512_v26 = vpop.eup %2511 }
 0xa48   :  { %1455 = vrot.lane.b32.xlu0 %v2506_v16, %s2548_s21 }
 0xa4a   :  { %1457 = vrot.lane.b32.xlu1 %v2508_v20, %s2548_s21 }
 0xa4c   :  { %1459 = vrot.lane.b32.xlu0 %v2510_v12, %s2548_s21 }
 0xa4e   :  { %1461 = vrot.lane.b32.xlu1 %v2512_v26, %s2548_s21 }
 0xab2   :  { %v1448_v59 = vpop.permute.xlu0 %1447 }
 0xab3   :  { %v1471_v31 = vmul.f32 %v1448_v59, %v3251_v8 }
 0xab4   :  { %v1450_v54 = vpop.permute.xlu1 %1449 }
 0xab5   :  { %v1472_v38 = vmul.f32 %v1450_v54, %v3265_v27  ;;  %1487 = vrot.lane.b32.xlu0 %v1471_v31, %s2547_s0 }
 0xab6   :  { %v1452_v1 = vpop.permute.xlu0 %1451 }
 0xab7   :  { %v1473_v5 = vmul.f32 %v3247_v6, %v1452_v1  ;;  %1489 = vrot.lane.b32.xlu1 %v1472_v38, %s2547_s0 }
 0xab8   :  { %v1454_v28 = vpop.permute.xlu1 %1453 }
 0xab9   :  { %v1474_v51 = vmul.f32 %v3257_v29, %v1454_v28  ;;  %1491 = vrot.lane.b32.xlu0 %v1473_v5, %s2547_s0  ;;  %v2069_v28 = vld [vmem:[%s3516_s6 + $0x2] ss:$0 sm:$0xff] }
 0xaba   :  { %v1456_v53 = vpop.permute.xlu0 %1455 }
 0xabb   :  { %v1475_v60 = vmul.f32 %v1456_v53, %v3253_v21  ;;  %1493 = vrot.lane.b32.xlu1 %v1474_v51, %s2547_s0  ;;  %v2071_v53 = vld [vmem:[%s3517_s7 + $0x2] ss:$0 sm:$0xff] }
 0xabc   :  { %v1458_v56 = vpop.permute.xlu1 %1457 }
 0xabd   :  { %v1476_v62 = vmul.f32 %v1458_v56, %v3267_v45  ;;  %1495 = vrot.lane.b32.xlu0 %v1475_v60, %s2547_s0 }
 0xabe   :  { %v1460_v36 = vpop.permute.xlu0 %1459 }
 0xabf   :  { %v1477_v19 = vmul.f32 %v3249_v7, %v1460_v36  ;;  %1497 = vrot.lane.b32.xlu1 %v1476_v62, %s2547_s0 }
 0xac0   :  { %v1462_v25 = vpop.permute.xlu1 %1461 }
 0xac1   :  { %v1478_v14 = vmul.f32 %v3259_v17, %v1462_v25  ;;  %1499 = vrot.lane.b32.xlu0 %v1477_v19, %s2547_s0 }
 0xac3   :  { %1501 = vrot.lane.b32.xlu1 %v1478_v14, %s2547_s0 }
 0xb27   :  { %v1488_v41 = vpop.permute.xlu0 %1487 }
 0xb28   :  { %v1511_v32 = vsel %vm1415_vm6, %v1488_v41, 0.0 }
 0xb29   :  { %1527 = vrot.lane.b32.xlu0 %v1511_v32, %s2548_s21  ;;  %v1490_v35 = vpop.permute.xlu1 %1489 }
 0xb2a   :  { %v1512_v11 = vsel %vm1416_vm7, %v1490_v35, 0.0 }
 0xb2b   :  { %v1492_v49 = vpop.permute.xlu0 %1491  ;;  %1529 = vrot.lane.b32.xlu1 %v1512_v11, %s2548_s21 }
 0xb2c   :  { %v1513_v33 = vsel %vm1417_vm5, %v1492_v49, 0.0 }
 0xb2d   :  { %1531 = vrot.lane.b32.xlu0 %v1513_v33, %s2548_s21  ;;  %v1494_v16 = vpop.permute.xlu1 %1493 }
 0xb2e   :  { %v1514_v20 = vsel %vm1418_vm2, %v1494_v16, 0.0 }
 0xb2f   :  { %v1496_v8 = vpop.permute.xlu0 %1495  ;;  %1533 = vrot.lane.b32.xlu1 %v1514_v20, %s2548_s21 }
 0xb30   :  { %v1515_v12 = vsel %vm1419_vm8, %v1496_v8, 0.0 }
 0xb31   :  { %1535 = vrot.lane.b32.xlu0 %v1515_v12, %s2548_s21  ;;  %v1498_v27 = vpop.permute.xlu1 %1497 }
 0xb32   :  { %v1516_v26 = vsel %vm1420_vm9, %v1498_v27, 0.0 }
 0xb33   :  { %v1500_v6 = vpop.permute.xlu0 %1499  ;;  %1537 = vrot.lane.b32.xlu1 %v1516_v26, %s2548_s21 }
 0xb34   :  { %v1517_v59 = vsel %vm1421_vm10, %v1500_v6, 0.0 }
 0xb35   :  { %1539 = vrot.lane.b32.xlu0 %v1517_v59, %s2548_s21  ;;  %v1502_v29 = vpop.permute.xlu1 %1501 }
 0xb36   :  { %v1518_v31 = vsel %vm1422_vm11, %v1502_v29, 0.0 }
 0xb37   :  { %1541 = vrot.lane.b32.xlu1 %v1518_v31, %s2548_s21 }
 0xb9b   :  { %v1528_v21 = vpop.permute.xlu0 %1527 }
 0xb9c   :  { %v1551_v54 = vadd.f32 %v1528_v21, %v1229_v18 }
 0xb9d   :  { %v1530_v45 = vpop.permute.xlu1 %1529 }
 0xb9e   :  { %v1552_v38 = vadd.f32 %v1530_v45, %v1230_v43  ;;  %2275 = vmatprep.mubr.msk.f32.mxu0 %vm207_vm1, %v1551_v54 }
 0xb9f   :  { %v1532_v7 = vpop.permute.xlu0 %1531 }
 0xba0   :  { %v1553_v1 = vadd.f32 %v1532_v7, %v1231_v58  ;;  %2276 = vmatmul.mubr.msk.f32.vlgmr.msra.gmra.mrb[28].mxu0 %vm207_vm1, %v1552_v38 }
 0xba1   :  { %v1534_v17 = vpop.permute.xlu1 %1533 }
 0xba2   :  { %v1554_v5 = vadd.f32 %v1534_v17, %v1232_v55  ;;  %2278 = vmatprep.mubr.msk.f32.mxu0 %vm207_vm1, %v1553_v1 }
 0xba3   :  { %v1536_v9 = vpop.permute.xlu0 %1535 }
 0xba4   :  { %v1555_v18 = vadd.f32 %v1536_v9, %v1233_v2  ;;  %2279 = vmatmul.mubr.msk.f32.gmra.mrb[30].mxu0 %vm207_vm1, %v1554_v5  ;;  %v1751_v2 = vld [vmem:[%s3518_s8 + $0x10] sm:$0xff] }
 0xba5   :  { %v1538_v3 = vpop.permute.xlu1 %1537  ;;  %v2339_v23 = vpack.c.bf16 %v1752_v47, %v1751_v2 }
 0xba6   :  { %v1556_v43 = vadd.f32 %v1538_v3, %v1234_v15  ;;  %2281 = vmatprep.mubr.msk.f32.mxu0 %vm207_vm1, %v1555_v18  ;;  %v2335_v15 = vpack.c.bf16 %v1750_v37, %v1749_v46 }
 0xba7   :  { %v1540_v39 = vpop.permute.xlu0 %1539 }
 0xba8   :  { %v1557_v58 = vadd.f32 %v1540_v39, %v1235_v57  ;;  %2282 = vmatmul.mubr.msk.f32.gmra.mrb[32].mxu0 %vm207_vm1, %v1556_v43  ;;  %2336 = vmatprep.subr.bf16.mxu1 %v2335_v15  ;;  %v2072_v43 = vld [vmem:[%s3519_s9] ss:$0 sm:$0xff] }
 0xba9   :  { %v1542_v42 = vpop.permute.xlu1 %1541  ;;  %2338 = vmatpush3.bf16.msra.mxu1 %v2335_v15 }
 0xbaa   :  { %v1558_v55 = vadd.f32 %v1542_v42, %v1236_v61  ;;  %2284 = vmatprep.mubr.msk.f32.mxu0 %vm207_vm1, %v1557_v58  ;;  %2340 = vmatprep.subr.bf16.mxu1 %v2339_v23  ;;  %v2059_v61 = vld [vmem:[%s3515_s5 + $0x2] ss:$0 sm:$0xff] }
 0xbac   :  { %2285 = vmatmul.mubr.msk.f32.gmra.mrb[34].mxu0 %vm207_vm1, %v1558_v55 }
 0xbad   :  { %2342 = vmatpush3.bf16.msra.mxu1 %v2339_v23 }
 0xc73   :  { %v2277_v57 = vpop.f32.mrb[28].mxu0 }
 0xc74   :  { %v1668_v10 = vadd.f32 %v2277_v57, %v2059_v61  ;;  %v1662_v30 = vpop.f32.mrb[29].mxu0 }
 0xc75   :  { %v1663_v34 = vadd.f32 %v2059_v61, %v1662_v30 }
 0xc76   :  { %v1702_v51 = vadd.f32 %v1668_v10, %v3130_v22 }
 0xc77   :  { %v1701_v60 = vadd.f32 %v1663_v34, %v3133_v24  ;;  %v2280_v56 = vpop.f32.mrb[30].mxu0 }
 0xc78   :  { %v1718_v62 = vmul.f32 %v2069_v28, %v1702_v51  ;;  %v1678_v36 = vadd.f32 %v2280_v56, %v2059_v61  ;;  %v1672_v19 = vpop.f32.mrb[31].mxu0 }
 0xc79   :  { %v1717_v25 = vmul.f32 %v2069_v28, %v1701_v60  ;;  %v1673_v14 = vadd.f32 %v2059_v61, %v1672_v19 }
 0xc7a   :  { %v1734_v0 = vadd.f32 %v2071_v53, %v1718_v62  ;;  %v1704_v4 = vadd.f32 %v1678_v36, %v3141_v63 }
 0xc7b   :  { %v1733_v40 = vadd.f32 %v2071_v53, %v1717_v25  ;;  %v1703_v41 = vadd.f32 %v1673_v14, %v3144_v48  ;;  %v2283_v32 = vpop.f32.mrb[32].mxu0 }
 0xc7c   :  { %v1720_v22 = vmul.f32 %v2069_v28, %v1704_v4  ;;  %v1688_v35 = vadd.f32 %v2283_v32, %v2059_v61  ;;  %v1682_v11 = vpop.f32.mrb[33].mxu0  ;;  %v1742_v24 = vmax.f32 %v1734_v0, 0.0 }
 0xc7d   :  { %v1741_v49 = vmax.f32 %v1733_v40, 0.0  ;;  %v1719_v33 = vmul.f32 %v2069_v28, %v1703_v41  ;;  %v1683_v16 = vadd.f32 %v2059_v61, %v1682_v11 }
 0xc7e   :  { %v1736_v20 = vadd.f32 %v2071_v53, %v1720_v22  ;;  %v1706_v8 = vadd.f32 %v1688_v35, %v3155_v44 }
 0xc7f   :  { %v1735_v12 = vadd.f32 %v2071_v53, %v1719_v33  ;;  %v1705_v27 = vadd.f32 %v1683_v16, %v3160_v50  ;;  %v2286_v26 = vpop.f32.mrb[34].mxu0  ;;  %2295 = vmatprep.mubr.msk.f32.mxu1 %vm207_vm1, %v1741_v49 }
 0xc80   :  { %v1722_v63 = vmul.f32 %v2069_v28, %v1706_v8  ;;  %v1698_v6 = vadd.f32 %v2286_v26, %v2059_v61  ;;  %v1692_v48 = vpop.f32.mrb[35].mxu0  ;;  %2296 = vmatmul.mubr.msk.f32.vlgmr.msra.gmra.mrb[20].mxu1 %vm207_vm1, %v1742_v24  ;;  %v1744_v21 = vmax.f32 %v1736_v20, 0.0 }
 0xc81   :  { %v1743_v59 = vmax.f32 %v1735_v12, 0.0  ;;  %v1721_v29 = vmul.f32 %v2069_v28, %v1705_v27  ;;  %v1693_v31 = vadd.f32 %v2059_v61, %v1692_v48 }
 0xc82   :  { %v1738_v54 = vadd.f32 %v2071_v53, %v1722_v63  ;;  %v1708_v45 = vadd.f32 %v1698_v6, %v3170_v13  ;;  %v1889_v13 = vlaneseq }
 0xc83   :  { %v1737_v38 = vadd.f32 %v2071_v53, %v1721_v29  ;;  %v1707_v44 = vadd.f32 %v1693_v31, %v3176_v52  ;;  %2298 = vmatprep.mubr.msk.f32.mxu1 %vm207_vm1, %v1743_v59 }
 0xc84   :  { %v1724_v50 = vmul.f32 %v2069_v28, %v1708_v45  ;;  %2299 = vmatmul.mubr.msk.f32.gmra.mrb[22].mxu1 %vm207_vm1, %v1744_v21  ;;  %v1746_v17 = vmax.f32 %v1738_v54, 0.0  ;;  %v3416_v52 = vand.u32 127, %v1889_v13 }
 0xc85   :  { %v1745_v7 = vmax.f32 %v1737_v38, 0.0  ;;  %v1723_v1 = vmul.f32 %v2069_v28, %v1707_v44 }
 0xc86   :  { %v1740_v5 = vadd.f32 %v2071_v53, %v1724_v50  ;;  %vm1891_vm12 = vcmp.lt.s32.totalorder %v3416_v52, 8 }
 0xc87   :  { %v1739_v9 = vadd.f32 %v2071_v53, %v1723_v1  ;;  %2301 = vmatprep.mubr.msk.f32.mxu1 %vm207_vm1, %v1745_v7 }
 0xc88   :  { %2302 = vmatmul.mubr.msk.f32.gmra.mrb[24].mxu1 %vm207_vm1, %v1746_v17  ;;  %v1748_v3 = vmax.f32 %v1740_v5, 0.0 }
 0xc89   :  { %v1747_v18 = vmax.f32 %v1739_v9, 0.0 }
 0xc8b   :  { %2304 = vmatprep.mubr.msk.f32.mxu1 %vm207_vm1, %v1747_v18 }
 0xc8c   :  { %2305 = vmatmul.mubr.msk.f32.gmra.mrb[26].mxu1 %vm207_vm1, %v1748_v3 }
 0xd53   :  { %v2297_v39 = vpop.f32.mrb[20].mxu1 }
 0xd54   :  { %v1856_v58 = vadd.f32 %v2297_v39, %v2072_v43  ;;  %v1850_v42 = vpop.f32.mrb[21].mxu1 }
 0xd55   :  { %v1851_v55 = vadd.f32 %v2072_v43, %v1850_v42 }
 0xd56   :  { %v1893_v46 = vsel %vm1891_vm12, %v1856_v58, -1e+30 }
 0xd57   :  { %1902 = vmax.xlane.f32.xlu1 %v1893_v46  ;;  %v2300_v37 = vpop.f32.mrb[22].mxu1  ;;  %v1892_v15 = vsel %vm1891_vm12, %v1851_v55, -1e+30 }
 0xd58   :  { %v1866_v2 = vadd.f32 %v2300_v37, %v2072_v43  ;;  %1900 = vmax.xlane.f32.xlu0 %v1892_v15  ;;  %v1860_v47 = vpop.f32.mrb[23].mxu1 }
 0xd59   :  { %v1861_v61 = vadd.f32 %v2072_v43, %v1860_v47 }
 0xd5a   :  { %v1895_v23 = vsel %vm1891_vm12, %v1866_v2, -1e+30 }
 0xd5b   :  { %v2303_v57 = vpop.f32.mrb[24].mxu1  ;;  %v1894_v51 = vsel %vm1891_vm12, %v1861_v61, -1e+30 }
 0xd5c   :  { %1906 = vmax.xlane.f32.xlu0 %v1895_v23  ;;  %v1870_v10 = vpop.f32.mrb[25].mxu1  ;;  %v1876_v28 = vadd.f32 %v2303_v57, %v2072_v43 }
 0xd5d   :  { %v1871_v30 = vadd.f32 %v2072_v43, %v1870_v10 }
 0xd5e   :  { %v1897_v36 = vsel %vm1891_vm12, %v1876_v28, -1e+30 }
 0xd5f   :  { %v2306_v34 = vpop.f32.mrb[26].mxu1  ;;  %v1896_v53 = vsel %vm1891_vm12, %v1871_v30, -1e+30 }
 0xd60   :  { %1904 = vmax.xlane.f32.xlu0 %v1894_v51  ;;  %1908 = vmax.xlane.f32.xlu1 %v1896_v53  ;;  %v1880_v60 = vpop.f32.mrb[27].mxu1  ;;  %v1886_v62 = vadd.f32 %v2306_v34, %v2072_v43 }
 0xd61   :  { %v1881_v56 = vadd.f32 %v2072_v43, %v1880_v60 }
 0xd62   :  { %v1899_v25 = vsel %vm1891_vm12, %v1886_v62, -1e+30 }
 0xd63   :  { %v1898_v19 = vsel %vm1891_vm12, %v1881_v56, -1e+30 }
 0xd64   :  { %1910 = vmax.xlane.f32.xlu0 %v1897_v36  ;;  %1912 = vmax.xlane.f32.xlu1 %v1898_v19 }
 0xd68   :  { %1914 = vmax.xlane.f32.xlu0 %v1899_v25 }
 0xde4   :  { %v1903_v14 = vpop.xlane.xlu1 %1902 }
 0xde5   :  { %v3438_v0 = vsub.f32 %v1893_v46, %v1903_v14  ;;  %v1901_v4 = vpop.xlane.xlu0 %1900 }
 0xde6   :  { %v3440_v40 = vsub.f32 %v1892_v15, %v1901_v4 }
 0xde7   :  { %v1926_v41 = vmul.f32 1.442695, %v3438_v0 }
 0xde8   :  { %v1924_v32 = vmul.f32 1.442695, %v3440_v40 }
 0xde9   :  { %2513 = vpow2.f32 %v1926_v41  ;;  %v1907_v22 = vpop.xlane.xlu0 %1906 }
 0xdea   :  { %2515 = vpow2.f32 %v1924_v32  ;;  %v3444_v35 = vsub.f32 %v1895_v23, %v1907_v22 }
 0xdec   :  { %v1930_v11 = vmul.f32 1.442695, %v3444_v35 }
 0xded   :  { %v1905_v49 = vpop.xlane.xlu0 %1904  ;;  %v1909_v33 = vpop.xlane.xlu1 %1908 }
 0xdee   :  { %2517 = vpow2.f32 %v1930_v11  ;;  %v3447_v16 = vsub.f32 %v1894_v51, %v1905_v49  ;;  %v3449_v24 = vsub.f32 %v1896_v53, %v1909_v33 }
 0xdf0   :  { %v1928_v20 = vmul.f32 1.442695, %v3447_v16  ;;  %v1932_v8 = vmul.f32 1.442695, %v3449_v24 }
 0xdf1   :  { %v1911_v12 = vpop.xlane.xlu0 %1910  ;;  %v1913_v27 = vpop.xlane.xlu1 %1912 }
 0xdf2   :  { %2519 = vpow2.f32 %v1928_v20  ;;  %v3453_v26 = vsub.f32 %v1897_v36, %v1911_v12  ;;  %v3455_v63 = vsub.f32 %v1898_v19, %v1913_v27 }
 0xdf3   :  { %v2514_v6 = vpop.eup %2513  ;;  %2521 = vpow2.f32 %v1932_v8 }
 0xdf4   :  { %v2516_v48 = vpop.eup %2515  ;;  %v1934_v59 = vmul.f32 1.442695, %v3453_v26  ;;  %v1936_v29 = vmul.f32 1.442695, %v3455_v63  ;;  %v1941_v31 = vsel %vm1891_vm12, %v2514_v6, 0.0 }
 0xdf5   :  { %v1915_v21 = vpop.xlane.xlu0 %1914  ;;  %1950 = vadd.xlane.f32.xlu0 %v1941_v31  ;;  %v1940_v54 = vsel %vm1891_vm12, %v2516_v48, 0.0 }
 0xdf6   :  { %2523 = vpow2.f32 %v1934_v59  ;;  %v3463_v45 = vsub.f32 %v1899_v25, %v1915_v21  ;;  %1948 = vadd.xlane.f32.xlu1 %v1940_v54 }
 0xdf7   :  { %2525 = vpow2.f32 %v1936_v29 }
 0xdf8   :  { %v2518_v38 = vpop.eup %2517  ;;  %v1938_v44 = vmul.f32 1.442695, %v3463_v45 }
 0xdf9   :  { %v1943_v50 = vsel %vm1891_vm12, %v2518_v38, 0.0 }
 0xdfa   :  { %2527 = vpow2.f32 %v1938_v44  ;;  %1954 = vadd.xlane.f32.xlu0 %v1943_v50 }
 0xdfc   :  { %v2520_v7 = vpop.eup %2519 }
 0xdfd   :  { %v1942_v1 = vsel %vm1891_vm12, %v2520_v7, 0.0  ;;  %v2522_v17 = vpop.eup %2521 }
 0xdfe   :  { %1952 = vadd.xlane.f32.xlu1 %v1942_v1  ;;  %v1944_v18 = vsel %vm1891_vm12, %v2522_v17, 0.0 }
 0xe00   :  { %v2524_v5 = vpop.eup %2523 }
 0xe01   :  { %v1945_v9 = vsel %vm1891_vm12, %v2524_v5, 0.0  ;;  %v2526_v3 = vpop.eup %2525 }
 0xe02   :  { %1958 = vadd.xlane.f32.xlu0 %v1945_v9  ;;  %1956 = vadd.xlane.f32.xlu1 %v1944_v18  ;;  %v1946_v39 = vsel %vm1891_vm12, %v2526_v3, 0.0 }
 0xe04   :  { %v2528_v13 = vpop.eup %2527 }
 0xe05   :  { %v1947_v43 = vsel %vm1891_vm12, %v2528_v13, 0.0 }
 0xe06   :  { %1962 = vadd.xlane.f32.xlu0 %v1947_v43  ;;  %1960 = vadd.xlane.f32.xlu1 %v1946_v39 }
 0xe82   :  { %v1951_v58 = vpop.xlane.xlu0 %1950 }
 0xe83   :  { %2529 = vlog2.f32 %v1951_v58  ;;  %v1949_v42 = vpop.xlane.xlu1 %1948 }
 0xe84   :  { %2531 = vlog2.f32 %v1949_v42 }
 0xe87   :  { %v1955_v55 = vpop.xlane.xlu0 %1954 }
 0xe88   :  { %2533 = vlog2.f32 %v1955_v55 }
 0xe8b   :  { %v1953_v46 = vpop.xlane.xlu1 %1952 }
 0xe8c   :  { %2535 = vlog2.f32 %v1953_v46 }
 0xe8d   :  { %v2530_v37 = vpop.eup %2529 }
 0xe8e   :  { %v2532_v15 = vpop.eup %2531  ;;  %v1967_v2 = vmul.f32 0.6931472, %v2530_v37 }
 0xe8f   :  { %v1965_v47 = vmul.f32 0.6931472, %v2532_v15  ;;  %v1959_v23 = vpop.xlane.xlu0 %1958  ;;  %v1957_v61 = vpop.xlane.xlu1 %1956 }
 0xe90   :  { %v1981_v57 = vsub.f32 %v3438_v0, %v1967_v2  ;;  %2537 = vlog2.f32 %v1959_v23 }
 0xe91   :  { %v1980_v52 = vsub.f32 %v3440_v40, %v1965_v47  ;;  %2539 = vlog2.f32 %v1957_v61 }
 0xe92   :  { %v2534_v10 = vpop.eup %2533  ;;  %1989 = vst [vmem:[%s3520_s10 + $0x8] sm:$0xff] %v1981_v57 }
 0xe93   :  { %1988 = vst [vmem:[%s3520_s10] sm:$0xff] %v1980_v52  ;;  %v1971_v30 = vmul.f32 0.6931472, %v2534_v10  ;;  %v1963_v28 = vpop.xlane.xlu0 %1962  ;;  %v1961_v34 = vpop.xlane.xlu1 %1960 }
 0xe94   :  { %2541 = vlog2.f32 %v1963_v28 }
 0xe95   :  { %v1983_v51 = vsub.f32 %v3444_v35, %v1971_v30  ;;  %2543 = vlog2.f32 %v1961_v34 }
 0xe96   :  { %v2536_v53 = vpop.eup %2535 }
 0xe97   :  { %1991 = vst [vmem:[%s3520_s10 + $0x18] sm:$0xff] %v1983_v51  ;;  %v1969_v60 = vmul.f32 0.6931472, %v2536_v53 }
 0xe99   :  { %v1982_v56 = vsub.f32 %v3447_v16, %v1969_v60 }
 0xe9a   :  { %v2538_v62 = vpop.eup %2537 }
 0xe9b   :  { %v2540_v36 = vpop.eup %2539  ;;  %1990 = vst [vmem:[%s3520_s10 + $0x10] sm:$0xff] %v1982_v56  ;;  %v1975_v19 = vmul.f32 0.6931472, %v2538_v62 }
 0xe9c   :  { %v1973_v25 = vmul.f32 0.6931472, %v2540_v36 }
 0xe9d   :  { %v1985_v14 = vsub.f32 %v3453_v26, %v1975_v19 }
 0xe9e   :  { %v2542_v0 = vpop.eup %2541  ;;  %v1984_v4 = vsub.f32 %v3449_v24, %v1973_v25 }
 0xe9f   :  { %v2544_v40 = vpop.eup %2543  ;;  %1993 = vst [vmem:[%s3520_s10 + $0x28] sm:$0xff] %v1985_v14  ;;  %v1979_v41 = vmul.f32 0.6931472, %v2542_v0 }
 0xea0   :  { %1992 = vst [vmem:[%s3520_s10 + $0x20] sm:$0xff] %v1984_v4  ;;  %v1977_v32 = vmul.f32 0.6931472, %v2544_v40 }
 0xea1   :  { %v1987_v22 = vsub.f32 %v3463_v45, %v1979_v41 }
 0xea2   :  { %v1986_v35 = vsub.f32 %v3455_v63, %v1977_v32 }
 0xea3   :  { %1995 = vst [vmem:[%s3520_s10 + $0x38] sm:$0xff] %v1987_v22 }
 0xea4   :  { %1994 = vst [vmem:[%s3520_s10 + $0x30] sm:$0xff] %v1986_v35 }

</bundles_post_ra>
